<compile_context>
chip_gen: v5e
topology: v5e:2x2
jax: 0.10.0
libtpu: 0.0.40
codegen_flags: <defaults>
</compile_context>

<pallas_src>
import jax
import jax.numpy as jnp
from jax.experimental import pallas as pl


# ----------------------------------------------------------------------------
# Fused kernel: 2-layer LSTM over all timesteps + Linear(H, 1) head.
# ----------------------------------------------------------------------------
def fused_lstm_fc_kernel(x_ref, wbd0_ref, b0t_ref, whh0_ref,
                         w1s_ref, b1_ref,
                         gsc_ref, gmul_ref, gadd_ref,
                         fcw_ref, fcb_ref, o_ref):
    B = x_ref.shape[0]
    H = whh0_ref.shape[0]
    G = 4 * H
    T = wbd0_ref.shape[1] // G

    x = x_ref[...]                       # (B, T*D)   one load, stays in vregs
    wbd0 = wbd0_ref[...]                 # (T*D, T*4H) block-diagonal W_ih0
    b0t = b0t_ref[...]                   # (1, T*4H)  tiled layer-0 bias
    whh0 = whh0_ref[...]                 # (H, 4H)
    w1s = w1s_ref[...]                   # (2H, 4H)   [W_ih1; W_hh1]

    # Hoisted broadcasts (outside the unrolled loop; JAX won't CSE them).
    gsc = jnp.broadcast_to(gsc_ref[...], (B, G))    # per-gate tanh arg scale
    gmul = jnp.broadcast_to(gmul_ref[...], (B, G))  # per-gate post-scale
    gadd = jnp.broadcast_to(gadd_ref[...], (B, G))  # per-gate post-offset
    b1 = jnp.broadcast_to(b1_ref[...], (B, G))

    # ---- Hoisted layer-0 input projection for ALL timesteps (off the serial
    # critical path): one 128-lane-aligned MXU matmul, bias folded once. ----
    gx0 = jnp.dot(x, wbd0, preferred_element_type=jnp.float32) + b0t  # (B, T*4H)

    def cell(gates, c_prev):
        # Packed nonlinearities on the full (B, 4H) gate vreg:
        #   sigmoid(x) = 0.5*tanh(0.5*x) + 0.5  (i, f, o lanes)
        #   tanh(x)    = 1.0*tanh(1.0*x) + 0.0  (g lanes)
        a = jnp.tanh(gates * gsc) * gmul + gadd
        i = a[:, 0 * H:1 * H]
        f = a[:, 1 * H:2 * H]
        g = a[:, 2 * H:3 * H]
        o = a[:, 3 * H:4 * H]
        c = f * c_prev + i * g
        h = o * jnp.tanh(c)
        return h, c

    zeros = jnp.zeros((B, H), jnp.float32)
    h0, c0 = zeros, zeros
    h1, c1 = zeros, zeros

    # ---- Fully unrolled recurrence (T small & static): state lives in vregs,
    # one recurrent matmul for layer 0 and one fused matmul for layer 1 per
    # step; nothing touches HBM per step. ----
    for t in range(T):
        g0 = gx0[:, t * G:(t + 1) * G] + jnp.dot(
            h0, whh0, preferred_element_type=jnp.float32)
        h0, c0 = cell(g0, c0)

        # TODO(synk): inter-layer LSTM dropout (train mode) omitted; eval = identity.
        # Fused layer-1 gates: [h0, h1] @ [W_ih1; W_hh1]  (halves MXU pushes/pops).
        g1 = jnp.dot(jnp.concatenate([h0, h1], axis=1), w1s,
                     preferred_element_type=jnp.float32) + b1
        h1, c1 = cell(g1, c1)

    # self.dropout(last_h): identity in eval mode.
    # FC head as VPU multiply + lane reduction (avoids an N=1 MXU matmul).
    o_ref[...] = (jnp.sum(h1 * fcw_ref[...], axis=-1, keepdims=True)
                  + fcb_ref[...])


# ----------------------------------------------------------------------------
# Wrapper: one pallas_call, grid=(), everything resident in VMEM (< 1.5 MiB).
# ----------------------------------------------------------------------------
@jax.jit
def lstm_network_forward(x_btd, kp):
    """x_btd: (B, T, D) batch_first, exactly as the PyTorch module."""
    B, T, D = x_btd.shape
    H = kp["whh0_t"].shape[0]
    G = 4 * H
    # Free, layout-preserving row-major reshape: no HBM transpose op.
    x2 = x_btd.reshape(B, T * D).astype(jnp.float32)

    def full(shape):
        return pl.BlockSpec(shape, lambda: (0,) * len(shape))

    return pl.pallas_call(
        fused_lstm_fc_kernel,
        out_shape=jax.ShapeDtypeStruct((B, 1), jnp.float32),
        grid=(),
        in_specs=[
            full((B, T * D)),        # x
            full((T * D, T * G)),    # block-diagonal W_ih0
            full((1, T * G)),        # tiled layer-0 bias
            full((H, G)),            # W_hh0
            full((2 * H, G)),        # stacked [W_ih1; W_hh1]
            full((1, G)),            # b1
            full((1, G)),            # gate scale
            full((1, G)),            # gate mul
            full((1, G)),            # gate add
            full((1, H)),            # fc weight row
            full((1, 1)),            # fc bias
        ],
        out_specs=full((B, 1)),
    )(x2, kp["wbd0"], kp["b0_tiled"], kp["whh0_t"],
      kp["w1_stacked"], kp["b1"],
      kp["gate_scale"], kp["gate_mul"], kp["gate_add"],
      kp["fc_w_row"], kp["fc_b"])


# ----------------------------------------------------------------------------
# Pure-JAX reference for verification (canonical parameter layout).
# ----------------------------------------------------------------------------
def reference_forward(x_btd, params):
    B, T, D = x_btd.shape
    H = params["whh0_t"].shape[0]

    def cell(g, c_prev):
        i = jax.nn.sigmoid(g[:, 0 * H:1 * H])
        f = jax.nn.sigmoid(g[:, 1 * H:2 * H])
        gg = jnp.tanh(g[:, 2 * H:3 * H])
        o = jax.nn.sigmoid(g[:, 3 * H:4 * H])
        c = f * c_prev + i * gg
        return o * jnp.tanh(c), c

    z = jnp.zeros((B, H), jnp.float32)
    h0, c0, h1, c1 = z, z, z, z
    for t in range(T):
        g0 = (x_btd[:, t, :].astype(jnp.float32) @ params["wih0_t"]
              + h0 @ params["whh0_t"] + params["b0"])
        h0, c0 = cell(g0, c0)
        g1 = h0 @ params["wih1_t"] + h1 @ params["whh1_t"] + params["b1"]
        h1, c1 = cell(g1, c1)
    return h1 @ params["fc_w_t"] + params["fc_b"]


# ----------------------------------------------------------------------------
# Deterministic parameter init (PyTorch-style uniform(-1/sqrt(H), 1/sqrt(H))).
# ----------------------------------------------------------------------------
def init_params(key, input_dim, hidden_dim):
    H = hidden_dim
    s = 1.0 / (H ** 0.5)
    ks = jax.random.split(key, 10)
    u = lambda k, shape: jax.random.uniform(k, shape, jnp.float32, -s, s)
    w_ih0 = u(ks[0], (4 * H, input_dim))
    w_hh0 = u(ks[1], (4 * H, H))
    b_ih0 = u(ks[2], (4 * H,))
    b_hh0 = u(ks[3], (4 * H,))
    w_ih1 = u(ks[4], (4 * H, H))
    w_hh1 = u(ks[5], (4 * H, H))
    b_ih1 = u(ks[6], (4 * H,))
    b_hh1 = u(ks[7], (4 * H,))
    fc_w = u(ks[8], (1, H))
    fc_b = u(ks[9], (1,))
    return {
        "wih0_t": w_ih0.T,                              # (D, 4H)
        "whh0_t": w_hh0.T,                              # (H, 4H)
        "b0": (b_ih0 + b_hh0).reshape(1, 4 * H),        # (1, 4H)
        "wih1_t": w_ih1.T,                              # (H, 4H)
        "whh1_t": w_hh1.T,                              # (H, 4H)
        "b1": (b_ih1 + b_hh1).reshape(1, 4 * H),        # (1, 4H)
        "fc_w_t": fc_w.T,                               # (H, 1)
        "fc_b": fc_b.reshape(1, 1),                     # (1, 1)
    }


# ----------------------------------------------------------------------------
# One-time kernel-layout parameter build (done once, outside the hot path).
# ----------------------------------------------------------------------------
def build_kernel_params(p, T):
    D = p["wih0_t"].shape[0]
    H = p["whh0_t"].shape[0]
    G = 4 * H

    # Block-diagonal layer-0 input weight: block (t,t) = W_ih0^T  -> (T*D, T*4H).
    wbd0 = jnp.kron(jnp.eye(T, dtype=jnp.float32), p["wih0_t"])
    b0_tiled = jnp.tile(p["b0"], (1, T))                # (1, T*4H)

    # Stacked layer-1 weight: [W_ih1; W_hh1] -> (2H, 4H).
    w1_stacked = jnp.concatenate([p["wih1_t"], p["whh1_t"]], axis=0)

    # Per-gate packed-activation constants (gate order i, f, g, o):
    #   sigmoid lanes: scale=0.5, mul=0.5, add=0.5 ; tanh (g) lanes: 1, 1, 0.
    def seg(vi, vf, vg, vo):
        return jnp.concatenate(
            [jnp.full((1, H), v, jnp.float32) for v in (vi, vf, vg, vo)], axis=1)

    return {
        "wbd0": wbd0,
        "b0_tiled": b0_tiled,
        "whh0_t": p["whh0_t"],
        "w1_stacked": w1_stacked,
        "b1": p["b1"],
        "gate_scale": seg(0.5, 0.5, 1.0, 0.5),
        "gate_mul": seg(0.5, 0.5, 1.0, 0.5),
        "gate_add": seg(0.5, 0.5, 0.0, 0.5),
        "fc_w_row": p["fc_w_t"].T,                      # (1, H)
        "fc_b": p["fc_b"],                              # (1, 1)
    }


if __name__ == "__main__":
    # Small shapes consistent with the module: batch=8, seq=8, input_dim=16, hidden=32.
    B, T, D, H = 8, 8, 16, 32

    key = jax.random.PRNGKey(0)
    kx, kparam = jax.random.split(key)
    x = jax.random.normal(kx, (B, T, D), jnp.float32)   # batch_first, like PyTorch
    params = init_params(kparam, D, H)
    kparams = build_kernel_params(params, T)

    out = jax.block_until_ready(lstm_network_forward(x, kparams))
    assert out.shape == (B, 1), out.shape

    ref = reference_forward(x, params)
    assert jnp.allclose(out, ref, atol=1e-5, rtol=1e-5), (
        f"max abs err {jnp.max(jnp.abs(out - ref))}")

    print("KERNEL_OK")
</pallas_src>

<mosaic_0001>
module attributes {stable_mosaic.version = 11 : i64} {
  func.func @fused_lstm_fc_kernel(%arg0: memref<8x128xf32, #tpu.memory_space<vmem>>, %arg1: memref<128x1024xf32, #tpu.memory_space<vmem>>, %arg2: memref<1x1024xf32, #tpu.memory_space<vmem>>, %arg3: memref<32x128xf32, #tpu.memory_space<vmem>>, %arg4: memref<64x128xf32, #tpu.memory_space<vmem>>, %arg5: memref<1x128xf32, #tpu.memory_space<vmem>>, %arg6: memref<1x128xf32, #tpu.memory_space<vmem>>, %arg7: memref<1x128xf32, #tpu.memory_space<vmem>>, %arg8: memref<1x128xf32, #tpu.memory_space<vmem>>, %arg9: memref<1x32xf32, #tpu.memory_space<vmem>>, %arg10: memref<1x1xf32, #tpu.memory_space<vmem>>, %arg11: memref<8x1xf32, #tpu.memory_space<vmem>>) attributes {dimension_semantics = [], scalar_prefetch = 0 : i64, scratch_operands = 0 : i64, tpu.core_type = #tpu.core_type<tc>} {
    %c0 = arith.constant 0 : index
    %c0_0 = arith.constant 0 : index
    %0 = vector.load %arg0[%c0, %c0_0] : memref<8x128xf32, #tpu.memory_space<vmem>>, vector<8x128xf32>
    %c0_1 = arith.constant 0 : index
    %c0_2 = arith.constant 0 : index
    %1 = vector.load %arg1[%c0_1, %c0_2] : memref<128x1024xf32, #tpu.memory_space<vmem>>, vector<128x1024xf32>
    %c0_3 = arith.constant 0 : index
    %c0_4 = arith.constant 0 : index
    %2 = vector.load %arg2[%c0_3, %c0_4] : memref<1x1024xf32, #tpu.memory_space<vmem>>, vector<1x1024xf32>
    %c0_5 = arith.constant 0 : index
    %c0_6 = arith.constant 0 : index
    %3 = vector.load %arg3[%c0_5, %c0_6] : memref<32x128xf32, #tpu.memory_space<vmem>>, vector<32x128xf32>
    %c0_7 = arith.constant 0 : index
    %c0_8 = arith.constant 0 : index
    %4 = vector.load %arg4[%c0_7, %c0_8] : memref<64x128xf32, #tpu.memory_space<vmem>>, vector<64x128xf32>
    %c0_9 = arith.constant 0 : index
    %c0_10 = arith.constant 0 : index
    %5 = vector.load %arg6[%c0_9, %c0_10] : memref<1x128xf32, #tpu.memory_space<vmem>>, vector<1x128xf32>
    %6 = vector.shape_cast %5 : vector<1x128xf32> to vector<1x128xf32>
    %7 = vector.broadcast %6 : vector<1x128xf32> to vector<8x128xf32>
    %c0_11 = arith.constant 0 : index
    %c0_12 = arith.constant 0 : index
    %8 = vector.load %arg7[%c0_11, %c0_12] : memref<1x128xf32, #tpu.memory_space<vmem>>, vector<1x128xf32>
    %9 = vector.shape_cast %8 : vector<1x128xf32> to vector<1x128xf32>
    %10 = vector.broadcast %9 : vector<1x128xf32> to vector<8x128xf32>
    %c0_13 = arith.constant 0 : index
    %c0_14 = arith.constant 0 : index
    %11 = vector.load %arg8[%c0_13, %c0_14] : memref<1x128xf32, #tpu.memory_space<vmem>>, vector<1x128xf32>
    %12 = vector.shape_cast %11 : vector<1x128xf32> to vector<1x128xf32>
    %13 = vector.broadcast %12 : vector<1x128xf32> to vector<8x128xf32>
    %c0_15 = arith.constant 0 : index
    %c0_16 = arith.constant 0 : index
    %14 = vector.load %arg5[%c0_15, %c0_16] : memref<1x128xf32, #tpu.memory_space<vmem>>, vector<1x128xf32>
    %15 = vector.shape_cast %14 : vector<1x128xf32> to vector<1x128xf32>
    %16 = vector.broadcast %15 : vector<1x128xf32> to vector<8x128xf32>
    %cst = arith.constant dense<0.000000e+00> : vector<8x1024xf32>
    %17 = tpu.matmul %0, %1, %cst {dimension_numbers = #tpu.dot_dimension_numbers<[1], [0], [0], [1], [0, 0, 1, 1], [], []>} : vector<8x128xf32>, vector<128x1024xf32>, vector<8x1024xf32> -> vector<8x1024xf32>
    %18 = vector.broadcast %2 : vector<1x1024xf32> to vector<8x1024xf32>
    %19 = arith.addf %17, %18 : vector<8x1024xf32>
    %cst_17 = arith.constant 0.000000e+00 : f32
    %20 = vector.broadcast %cst_17 : f32 to vector<8x32xf32>
    %21 = vector.extract_strided_slice %19 {offsets = [0, 0], sizes = [8, 128], strides = [1, 1]} : vector<8x1024xf32> to vector<8x128xf32>
    %cst_18 = arith.constant dense<0.000000e+00> : vector<8x128xf32>
    %22 = tpu.matmul %20, %3, %cst_18 {dimension_numbers = #tpu.dot_dimension_numbers<[1], [0], [0], [1], [0, 0, 1, 1], [], []>} : vector<8x32xf32>, vector<32x128xf32>, vector<8x128xf32> -> vector<8x128xf32>
    %23 = arith.addf %21, %22 : vector<8x128xf32>
    %24 = arith.mulf %23, %7 : vector<8x128xf32>
    %25 = math.tanh %24 : vector<8x128xf32>
    %26 = arith.mulf %25, %10 : vector<8x128xf32>
    %27 = arith.addf %26, %13 : vector<8x128xf32>
    %28 = vector.extract_strided_slice %27 {offsets = [0, 0], sizes = [8, 32], strides = [1, 1]} : vector<8x128xf32> to vector<8x32xf32>
    %29 = vector.extract_strided_slice %27 {offsets = [0, 32], sizes = [8, 32], strides = [1, 1]} : vector<8x128xf32> to vector<8x32xf32>
    %30 = vector.extract_strided_slice %27 {offsets = [0, 64], sizes = [8, 32], strides = [1, 1]} : vector<8x128xf32> to vector<8x32xf32>
    %31 = vector.extract_strided_slice %27 {offsets = [0, 96], sizes = [8, 32], strides = [1, 1]} : vector<8x128xf32> to vector<8x32xf32>
    %32 = arith.mulf %29, %20 : vector<8x32xf32>
    %33 = arith.mulf %28, %30 : vector<8x32xf32>
    %34 = arith.addf %32, %33 : vector<8x32xf32>
    %35 = math.tanh %34 : vector<8x32xf32>
    %36 = arith.mulf %31, %35 : vector<8x32xf32>
    %37 = tpu.concatenate %36, %20 in 1 : vector<8x32xf32>, vector<8x32xf32> -> vector<8x64xf32>
    %cst_19 = arith.constant dense<0.000000e+00> : vector<8x128xf32>
    %38 = tpu.matmul %37, %4, %cst_19 {dimension_numbers = #tpu.dot_dimension_numbers<[1], [0], [0], [1], [0, 0, 1, 1], [], []>} : vector<8x64xf32>, vector<64x128xf32>, vector<8x128xf32> -> vector<8x128xf32>
    %39 = arith.addf %38, %16 : vector<8x128xf32>
    %40 = arith.mulf %39, %7 : vector<8x128xf32>
    %41 = math.tanh %40 : vector<8x128xf32>
    %42 = arith.mulf %41, %10 : vector<8x128xf32>
    %43 = arith.addf %42, %13 : vector<8x128xf32>
    %44 = vector.extract_strided_slice %43 {offsets = [0, 0], sizes = [8, 32], strides = [1, 1]} : vector<8x128xf32> to vector<8x32xf32>
    %45 = vector.extract_strided_slice %43 {offsets = [0, 32], sizes = [8, 32], strides = [1, 1]} : vector<8x128xf32> to vector<8x32xf32>
    %46 = vector.extract_strided_slice %43 {offsets = [0, 64], sizes = [8, 32], strides = [1, 1]} : vector<8x128xf32> to vector<8x32xf32>
    %47 = vector.extract_strided_slice %43 {offsets = [0, 96], sizes = [8, 32], strides = [1, 1]} : vector<8x128xf32> to vector<8x32xf32>
    %48 = arith.mulf %45, %20 : vector<8x32xf32>
    %49 = arith.mulf %44, %46 : vector<8x32xf32>
    %50 = arith.addf %48, %49 : vector<8x32xf32>
    %51 = math.tanh %50 : vector<8x32xf32>
    %52 = arith.mulf %47, %51 : vector<8x32xf32>
    %53 = vector.extract_strided_slice %19 {offsets = [0, 128], sizes = [8, 128], strides = [1, 1]} : vector<8x1024xf32> to vector<8x128xf32>
    %cst_20 = arith.constant dense<0.000000e+00> : vector<8x128xf32>
    %54 = tpu.matmul %36, %3, %cst_20 {dimension_numbers = #tpu.dot_dimension_numbers<[1], [0], [0], [1], [0, 0, 1, 1], [], []>} : vector<8x32xf32>, vector<32x128xf32>, vector<8x128xf32> -> vector<8x128xf32>
    %55 = arith.addf %53, %54 : vector<8x128xf32>
    %56 = arith.mulf %55, %7 : vector<8x128xf32>
    %57 = math.tanh %56 : vector<8x128xf32>
    %58 = arith.mulf %57, %10 : vector<8x128xf32>
    %59 = arith.addf %58, %13 : vector<8x128xf32>
    %60 = vector.extract_strided_slice %59 {offsets = [0, 0], sizes = [8, 32], strides = [1, 1]} : vector<8x128xf32> to vector<8x32xf32>
    %61 = vector.extract_strided_slice %59 {offsets = [0, 32], sizes = [8, 32], strides = [1, 1]} : vector<8x128xf32> to vector<8x32xf32>
    %62 = vector.extract_strided_slice %59 {offsets = [0, 64], sizes = [8, 32], strides = [1, 1]} : vector<8x128xf32> to vector<8x32xf32>
    %63 = vector.extract_strided_slice %59 {offsets = [0, 96], sizes = [8, 32], strides = [1, 1]} : vector<8x128xf32> to vector<8x32xf32>
    %64 = arith.mulf %61, %34 : vector<8x32xf32>
    %65 = arith.mulf %60, %62 : vector<8x32xf32>
    %66 = arith.addf %64, %65 : vector<8x32xf32>
    %67 = math.tanh %66 : vector<8x32xf32>
    %68 = arith.mulf %63, %67 : vector<8x32xf32>
    %69 = tpu.concatenate %68, %52 in 1 : vector<8x32xf32>, vector<8x32xf32> -> vector<8x64xf32>
    %cst_21 = arith.constant dense<0.000000e+00> : vector<8x128xf32>
    %70 = tpu.matmul %69, %4, %cst_21 {dimension_numbers = #tpu.dot_dimension_numbers<[1], [0], [0], [1], [0, 0, 1, 1], [], []>} : vector<8x64xf32>, vector<64x128xf32>, vector<8x128xf32> -> vector<8x128xf32>
    %71 = arith.addf %70, %16 : vector<8x128xf32>
    %72 = arith.mulf %71, %7 : vector<8x128xf32>
    %73 = math.tanh %72 : vector<8x128xf32>
    %74 = arith.mulf %73, %10 : vector<8x128xf32>
    %75 = arith.addf %74, %13 : vector<8x128xf32>
    %76 = vector.extract_strided_slice %75 {offsets = [0, 0], sizes = [8, 32], strides = [1, 1]} : vector<8x128xf32> to vector<8x32xf32>
    %77 = vector.extract_strided_slice %75 {offsets = [0, 32], sizes = [8, 32], strides = [1, 1]} : vector<8x128xf32> to vector<8x32xf32>
    %78 = vector.extract_strided_slice %75 {offsets = [0, 64], sizes = [8, 32], strides = [1, 1]} : vector<8x128xf32> to vector<8x32xf32>
    %79 = vector.extract_strided_slice %75 {offsets = [0, 96], sizes = [8, 32], strides = [1, 1]} : vector<8x128xf32> to vector<8x32xf32>
    %80 = arith.mulf %77, %50 : vector<8x32xf32>
    %81 = arith.mulf %76, %78 : vector<8x32xf32>
    %82 = arith.addf %80, %81 : vector<8x32xf32>
    %83 = math.tanh %82 : vector<8x32xf32>
    %84 = arith.mulf %79, %83 : vector<8x32xf32>
    %85 = vector.extract_strided_slice %19 {offsets = [0, 256], sizes = [8, 128], strides = [1, 1]} : vector<8x1024xf32> to vector<8x128xf32>
    %cst_22 = arith.constant dense<0.000000e+00> : vector<8x128xf32>
    %86 = tpu.matmul %68, %3, %cst_22 {dimension_numbers = #tpu.dot_dimension_numbers<[1], [0], [0], [1], [0, 0, 1, 1], [], []>} : vector<8x32xf32>, vector<32x128xf32>, vector<8x128xf32> -> vector<8x128xf32>
    %87 = arith.addf %85, %86 : vector<8x128xf32>
    %88 = arith.mulf %87, %7 : vector<8x128xf32>
    %89 = math.tanh %88 : vector<8x128xf32>
    %90 = arith.mulf %89, %10 : vector<8x128xf32>
    %91 = arith.addf %90, %13 : vector<8x128xf32>
    %92 = vector.extract_strided_slice %91 {offsets = [0, 0], sizes = [8, 32], strides = [1, 1]} : vector<8x128xf32> to vector<8x32xf32>
    %93 = vector.extract_strided_slice %91 {offsets = [0, 32], sizes = [8, 32], strides = [1, 1]} : vector<8x128xf32> to vector<8x32xf32>
    %94 = vector.extract_strided_slice %91 {offsets = [0, 64], sizes = [8, 32], strides = [1, 1]} : vector<8x128xf32> to vector<8x32xf32>
    %95 = vector.extract_strided_slice %91 {offsets = [0, 96], sizes = [8, 32], strides = [1, 1]} : vector<8x128xf32> to vector<8x32xf32>
    %96 = arith.mulf %93, %66 : vector<8x32xf32>
    %97 = arith.mulf %92, %94 : vector<8x32xf32>
    %98 = arith.addf %96, %97 : vector<8x32xf32>
    %99 = math.tanh %98 : vector<8x32xf32>
    %100 = arith.mulf %95, %99 : vector<8x32xf32>
    %101 = tpu.concatenate %100, %84 in 1 : vector<8x32xf32>, vector<8x32xf32> -> vector<8x64xf32>
    %cst_23 = arith.constant dense<0.000000e+00> : vector<8x128xf32>
    %102 = tpu.matmul %101, %4, %cst_23 {dimension_numbers = #tpu.dot_dimension_numbers<[1], [0], [0], [1], [0, 0, 1, 1], [], []>} : vector<8x64xf32>, vector<64x128xf32>, vector<8x128xf32> -> vector<8x128xf32>
    %103 = arith.addf %102, %16 : vector<8x128xf32>
    %104 = arith.mulf %103, %7 : vector<8x128xf32>
    %105 = math.tanh %104 : vector<8x128xf32>
    %106 = arith.mulf %105, %10 : vector<8x128xf32>
    %107 = arith.addf %106, %13 : vector<8x128xf32>
    %108 = vector.extract_strided_slice %107 {offsets = [0, 0], sizes = [8, 32], strides = [1, 1]} : vector<8x128xf32> to vector<8x32xf32>
    %109 = vector.extract_strided_slice %107 {offsets = [0, 32], sizes = [8, 32], strides = [1, 1]} : vector<8x128xf32> to vector<8x32xf32>
    %110 = vector.extract_strided_slice %107 {offsets = [0, 64], sizes = [8, 32], strides = [1, 1]} : vector<8x128xf32> to vector<8x32xf32>
    %111 = vector.extract_strided_slice %107 {offsets = [0, 96], sizes = [8, 32], strides = [1, 1]} : vector<8x128xf32> to vector<8x32xf32>
    %112 = arith.mulf %109, %82 : vector<8x32xf32>
    %113 = arith.mulf %108, %110 : vector<8x32xf32>
    %114 = arith.addf %112, %113 : vector<8x32xf32>
    %115 = math.tanh %114 : vector<8x32xf32>
    %116 = arith.mulf %111, %115 : vector<8x32xf32>
    %117 = vector.extract_strided_slice %19 {offsets = [0, 384], sizes = [8, 128], strides = [1, 1]} : vector<8x1024xf32> to vector<8x128xf32>
    %cst_24 = arith.constant dense<0.000000e+00> : vector<8x128xf32>
    %118 = tpu.matmul %100, %3, %cst_24 {dimension_numbers = #tpu.dot_dimension_numbers<[1], [0], [0], [1], [0, 0, 1, 1], [], []>} : vector<8x32xf32>, vector<32x128xf32>, vector<8x128xf32> -> vector<8x128xf32>
    %119 = arith.addf %117, %118 : vector<8x128xf32>
    %120 = arith.mulf %119, %7 : vector<8x128xf32>
    %121 = math.tanh %120 : vector<8x128xf32>
    %122 = arith.mulf %121, %10 : vector<8x128xf32>
    %123 = arith.addf %122, %13 : vector<8x128xf32>
    %124 = vector.extract_strided_slice %123 {offsets = [0, 0], sizes = [8, 32], strides = [1, 1]} : vector<8x128xf32> to vector<8x32xf32>
    %125 = vector.extract_strided_slice %123 {offsets = [0, 32], sizes = [8, 32], strides = [1, 1]} : vector<8x128xf32> to vector<8x32xf32>
    %126 = vector.extract_strided_slice %123 {offsets = [0, 64], sizes = [8, 32], strides = [1, 1]} : vector<8x128xf32> to vector<8x32xf32>
    %127 = vector.extract_strided_slice %123 {offsets = [0, 96], sizes = [8, 32], strides = [1, 1]} : vector<8x128xf32> to vector<8x32xf32>
    %128 = arith.mulf %125, %98 : vector<8x32xf32>
    %129 = arith.mulf %124, %126 : vector<8x32xf32>
    %130 = arith.addf %128, %129 : vector<8x32xf32>
    %131 = math.tanh %130 : vector<8x32xf32>
    %132 = arith.mulf %127, %131 : vector<8x32xf32>
    %133 = tpu.concatenate %132, %116 in 1 : vector<8x32xf32>, vector<8x32xf32> -> vector<8x64xf32>
    %cst_25 = arith.constant dense<0.000000e+00> : vector<8x128xf32>
    %134 = tpu.matmul %133, %4, %cst_25 {dimension_numbers = #tpu.dot_dimension_numbers<[1], [0], [0], [1], [0, 0, 1, 1], [], []>} : vector<8x64xf32>, vector<64x128xf32>, vector<8x128xf32> -> vector<8x128xf32>
    %135 = arith.addf %134, %16 : vector<8x128xf32>
    %136 = arith.mulf %135, %7 : vector<8x128xf32>
    %137 = math.tanh %136 : vector<8x128xf32>
    %138 = arith.mulf %137, %10 : vector<8x128xf32>
    %139 = arith.addf %138, %13 : vector<8x128xf32>
    %140 = vector.extract_strided_slice %139 {offsets = [0, 0], sizes = [8, 32], strides = [1, 1]} : vector<8x128xf32> to vector<8x32xf32>
    %141 = vector.extract_strided_slice %139 {offsets = [0, 32], sizes = [8, 32], strides = [1, 1]} : vector<8x128xf32> to vector<8x32xf32>
    %142 = vector.extract_strided_slice %139 {offsets = [0, 64], sizes = [8, 32], strides = [1, 1]} : vector<8x128xf32> to vector<8x32xf32>
    %143 = vector.extract_strided_slice %139 {offsets = [0, 96], sizes = [8, 32], strides = [1, 1]} : vector<8x128xf32> to vector<8x32xf32>
    %144 = arith.mulf %141, %114 : vector<8x32xf32>
    %145 = arith.mulf %140, %142 : vector<8x32xf32>
    %146 = arith.addf %144, %145 : vector<8x32xf32>
    %147 = math.tanh %146 : vector<8x32xf32>
    %148 = arith.mulf %143, %147 : vector<8x32xf32>
    %149 = vector.extract_strided_slice %19 {offsets = [0, 512], sizes = [8, 128], strides = [1, 1]} : vector<8x1024xf32> to vector<8x128xf32>
    %cst_26 = arith.constant dense<0.000000e+00> : vector<8x128xf32>
    %150 = tpu.matmul %132, %3, %cst_26 {dimension_numbers = #tpu.dot_dimension_numbers<[1], [0], [0], [1], [0, 0, 1, 1], [], []>} : vector<8x32xf32>, vector<32x128xf32>, vector<8x128xf32> -> vector<8x128xf32>
    %151 = arith.addf %149, %150 : vector<8x128xf32>
    %152 = arith.mulf %151, %7 : vector<8x128xf32>
    %153 = math.tanh %152 : vector<8x128xf32>
    %154 = arith.mulf %153, %10 : vector<8x128xf32>
    %155 = arith.addf %154, %13 : vector<8x128xf32>
    %156 = vector.extract_strided_slice %155 {offsets = [0, 0], sizes = [8, 32], strides = [1, 1]} : vector<8x128xf32> to vector<8x32xf32>
    %157 = vector.extract_strided_slice %155 {offsets = [0, 32], sizes = [8, 32], strides = [1, 1]} : vector<8x128xf32> to vector<8x32xf32>
    %158 = vector.extract_strided_slice %155 {offsets = [0, 64], sizes = [8, 32], strides = [1, 1]} : vector<8x128xf32> to vector<8x32xf32>
    %159 = vector.extract_strided_slice %155 {offsets = [0, 96], sizes = [8, 32], strides = [1, 1]} : vector<8x128xf32> to vector<8x32xf32>
    %160 = arith.mulf %157, %130 : vector<8x32xf32>
    %161 = arith.mulf %156, %158 : vector<8x32xf32>
    %162 = arith.addf %160, %161 : vector<8x32xf32>
    %163 = math.tanh %162 : vector<8x32xf32>
    %164 = arith.mulf %159, %163 : vector<8x32xf32>
    %165 = tpu.concatenate %164, %148 in 1 : vector<8x32xf32>, vector<8x32xf32> -> vector<8x64xf32>
    %cst_27 = arith.constant dense<0.000000e+00> : vector<8x128xf32>
    %166 = tpu.matmul %165, %4, %cst_27 {dimension_numbers = #tpu.dot_dimension_numbers<[1], [0], [0], [1], [0, 0, 1, 1], [], []>} : vector<8x64xf32>, vector<64x128xf32>, vector<8x128xf32> -> vector<8x128xf32>
    %167 = arith.addf %166, %16 : vector<8x128xf32>
    %168 = arith.mulf %167, %7 : vector<8x128xf32>
    %169 = math.tanh %168 : vector<8x128xf32>
    %170 = arith.mulf %169, %10 : vector<8x128xf32>
    %171 = arith.addf %170, %13 : vector<8x128xf32>
    %172 = vector.extract_strided_slice %171 {offsets = [0, 0], sizes = [8, 32], strides = [1, 1]} : vector<8x128xf32> to vector<8x32xf32>
    %173 = vector.extract_strided_slice %171 {offsets = [0, 32], sizes = [8, 32], strides = [1, 1]} : vector<8x128xf32> to vector<8x32xf32>
    %174 = vector.extract_strided_slice %171 {offsets = [0, 64], sizes = [8, 32], strides = [1, 1]} : vector<8x128xf32> to vector<8x32xf32>
    %175 = vector.extract_strided_slice %171 {offsets = [0, 96], sizes = [8, 32], strides = [1, 1]} : vector<8x128xf32> to vector<8x32xf32>
    %176 = arith.mulf %173, %146 : vector<8x32xf32>
    %177 = arith.mulf %172, %174 : vector<8x32xf32>
    %178 = arith.addf %176, %177 : vector<8x32xf32>
    %179 = math.tanh %178 : vector<8x32xf32>
    %180 = arith.mulf %175, %179 : vector<8x32xf32>
    %181 = vector.extract_strided_slice %19 {offsets = [0, 640], sizes = [8, 128], strides = [1, 1]} : vector<8x1024xf32> to vector<8x128xf32>
    %cst_28 = arith.constant dense<0.000000e+00> : vector<8x128xf32>
    %182 = tpu.matmul %164, %3, %cst_28 {dimension_numbers = #tpu.dot_dimension_numbers<[1], [0], [0], [1], [0, 0, 1, 1], [], []>} : vector<8x32xf32>, vector<32x128xf32>, vector<8x128xf32> -> vector<8x128xf32>
    %183 = arith.addf %181, %182 : vector<8x128xf32>
    %184 = arith.mulf %183, %7 : vector<8x128xf32>
    %185 = math.tanh %184 : vector<8x128xf32>
    %186 = arith.mulf %185, %10 : vector<8x128xf32>
    %187 = arith.addf %186, %13 : vector<8x128xf32>
    %188 = vector.extract_strided_slice %187 {offsets = [0, 0], sizes = [8, 32], strides = [1, 1]} : vector<8x128xf32> to vector<8x32xf32>
    %189 = vector.extract_strided_slice %187 {offsets = [0, 32], sizes = [8, 32], strides = [1, 1]} : vector<8x128xf32> to vector<8x32xf32>
    %190 = vector.extract_strided_slice %187 {offsets = [0, 64], sizes = [8, 32], strides = [1, 1]} : vector<8x128xf32> to vector<8x32xf32>
    %191 = vector.extract_strided_slice %187 {offsets = [0, 96], sizes = [8, 32], strides = [1, 1]} : vector<8x128xf32> to vector<8x32xf32>
    %192 = arith.mulf %189, %162 : vector<8x32xf32>
    %193 = arith.mulf %188, %190 : vector<8x32xf32>
    %194 = arith.addf %192, %193 : vector<8x32xf32>
    %195 = math.tanh %194 : vector<8x32xf32>
    %196 = arith.mulf %191, %195 : vector<8x32xf32>
    %197 = tpu.concatenate %196, %180 in 1 : vector<8x32xf32>, vector<8x32xf32> -> vector<8x64xf32>
    %cst_29 = arith.constant dense<0.000000e+00> : vector<8x128xf32>
    %198 = tpu.matmul %197, %4, %cst_29 {dimension_numbers = #tpu.dot_dimension_numbers<[1], [0], [0], [1], [0, 0, 1, 1], [], []>} : vector<8x64xf32>, vector<64x128xf32>, vector<8x128xf32> -> vector<8x128xf32>
    %199 = arith.addf %198, %16 : vector<8x128xf32>
    %200 = arith.mulf %199, %7 : vector<8x128xf32>
    %201 = math.tanh %200 : vector<8x128xf32>
    %202 = arith.mulf %201, %10 : vector<8x128xf32>
    %203 = arith.addf %202, %13 : vector<8x128xf32>
    %204 = vector.extract_strided_slice %203 {offsets = [0, 0], sizes = [8, 32], strides = [1, 1]} : vector<8x128xf32> to vector<8x32xf32>
    %205 = vector.extract_strided_slice %203 {offsets = [0, 32], sizes = [8, 32], strides = [1, 1]} : vector<8x128xf32> to vector<8x32xf32>
    %206 = vector.extract_strided_slice %203 {offsets = [0, 64], sizes = [8, 32], strides = [1, 1]} : vector<8x128xf32> to vector<8x32xf32>
    %207 = vector.extract_strided_slice %203 {offsets = [0, 96], sizes = [8, 32], strides = [1, 1]} : vector<8x128xf32> to vector<8x32xf32>
    %208 = arith.mulf %205, %178 : vector<8x32xf32>
    %209 = arith.mulf %204, %206 : vector<8x32xf32>
    %210 = arith.addf %208, %209 : vector<8x32xf32>
    %211 = math.tanh %210 : vector<8x32xf32>
    %212 = arith.mulf %207, %211 : vector<8x32xf32>
    %213 = vector.extract_strided_slice %19 {offsets = [0, 768], sizes = [8, 128], strides = [1, 1]} : vector<8x1024xf32> to vector<8x128xf32>
    %cst_30 = arith.constant dense<0.000000e+00> : vector<8x128xf32>
    %214 = tpu.matmul %196, %3, %cst_30 {dimension_numbers = #tpu.dot_dimension_numbers<[1], [0], [0], [1], [0, 0, 1, 1], [], []>} : vector<8x32xf32>, vector<32x128xf32>, vector<8x128xf32> -> vector<8x128xf32>
    %215 = arith.addf %213, %214 : vector<8x128xf32>
    %216 = arith.mulf %215, %7 : vector<8x128xf32>
    %217 = math.tanh %216 : vector<8x128xf32>
    %218 = arith.mulf %217, %10 : vector<8x128xf32>
    %219 = arith.addf %218, %13 : vector<8x128xf32>
    %220 = vector.extract_strided_slice %219 {offsets = [0, 0], sizes = [8, 32], strides = [1, 1]} : vector<8x128xf32> to vector<8x32xf32>
    %221 = vector.extract_strided_slice %219 {offsets = [0, 32], sizes = [8, 32], strides = [1, 1]} : vector<8x128xf32> to vector<8x32xf32>
    %222 = vector.extract_strided_slice %219 {offsets = [0, 64], sizes = [8, 32], strides = [1, 1]} : vector<8x128xf32> to vector<8x32xf32>
    %223 = vector.extract_strided_slice %219 {offsets = [0, 96], sizes = [8, 32], strides = [1, 1]} : vector<8x128xf32> to vector<8x32xf32>
    %224 = arith.mulf %221, %194 : vector<8x32xf32>
    %225 = arith.mulf %220, %222 : vector<8x32xf32>
    %226 = arith.addf %224, %225 : vector<8x32xf32>
    %227 = math.tanh %226 : vector<8x32xf32>
    %228 = arith.mulf %223, %227 : vector<8x32xf32>
    %229 = tpu.concatenate %228, %212 in 1 : vector<8x32xf32>, vector<8x32xf32> -> vector<8x64xf32>
    %cst_31 = arith.constant dense<0.000000e+00> : vector<8x128xf32>
    %230 = tpu.matmul %229, %4, %cst_31 {dimension_numbers = #tpu.dot_dimension_numbers<[1], [0], [0], [1], [0, 0, 1, 1], [], []>} : vector<8x64xf32>, vector<64x128xf32>, vector<8x128xf32> -> vector<8x128xf32>
    %231 = arith.addf %230, %16 : vector<8x128xf32>
    %232 = arith.mulf %231, %7 : vector<8x128xf32>
    %233 = math.tanh %232 : vector<8x128xf32>
    %234 = arith.mulf %233, %10 : vector<8x128xf32>
    %235 = arith.addf %234, %13 : vector<8x128xf32>
    %236 = vector.extract_strided_slice %235 {offsets = [0, 0], sizes = [8, 32], strides = [1, 1]} : vector<8x128xf32> to vector<8x32xf32>
    %237 = vector.extract_strided_slice %235 {offsets = [0, 32], sizes = [8, 32], strides = [1, 1]} : vector<8x128xf32> to vector<8x32xf32>
    %238 = vector.extract_strided_slice %235 {offsets = [0, 64], sizes = [8, 32], strides = [1, 1]} : vector<8x128xf32> to vector<8x32xf32>
    %239 = vector.extract_strided_slice %235 {offsets = [0, 96], sizes = [8, 32], strides = [1, 1]} : vector<8x128xf32> to vector<8x32xf32>
    %240 = arith.mulf %237, %210 : vector<8x32xf32>
    %241 = arith.mulf %236, %238 : vector<8x32xf32>
    %242 = arith.addf %240, %241 : vector<8x32xf32>
    %243 = math.tanh %242 : vector<8x32xf32>
    %244 = arith.mulf %239, %243 : vector<8x32xf32>
    %245 = vector.extract_strided_slice %19 {offsets = [0, 896], sizes = [8, 128], strides = [1, 1]} : vector<8x1024xf32> to vector<8x128xf32>
    %cst_32 = arith.constant dense<0.000000e+00> : vector<8x128xf32>
    %246 = tpu.matmul %228, %3, %cst_32 {dimension_numbers = #tpu.dot_dimension_numbers<[1], [0], [0], [1], [0, 0, 1, 1], [], []>} : vector<8x32xf32>, vector<32x128xf32>, vector<8x128xf32> -> vector<8x128xf32>
    %247 = arith.addf %245, %246 : vector<8x128xf32>
    %248 = arith.mulf %247, %7 : vector<8x128xf32>
    %249 = math.tanh %248 : vector<8x128xf32>
    %250 = arith.mulf %249, %10 : vector<8x128xf32>
    %251 = arith.addf %250, %13 : vector<8x128xf32>
    %252 = vector.extract_strided_slice %251 {offsets = [0, 0], sizes = [8, 32], strides = [1, 1]} : vector<8x128xf32> to vector<8x32xf32>
    %253 = vector.extract_strided_slice %251 {offsets = [0, 32], sizes = [8, 32], strides = [1, 1]} : vector<8x128xf32> to vector<8x32xf32>
    %254 = vector.extract_strided_slice %251 {offsets = [0, 64], sizes = [8, 32], strides = [1, 1]} : vector<8x128xf32> to vector<8x32xf32>
    %255 = vector.extract_strided_slice %251 {offsets = [0, 96], sizes = [8, 32], strides = [1, 1]} : vector<8x128xf32> to vector<8x32xf32>
    %256 = arith.mulf %253, %226 : vector<8x32xf32>
    %257 = arith.mulf %252, %254 : vector<8x32xf32>
    %258 = arith.addf %256, %257 : vector<8x32xf32>
    %259 = math.tanh %258 : vector<8x32xf32>
    %260 = arith.mulf %255, %259 : vector<8x32xf32>
    %261 = tpu.concatenate %260, %244 in 1 : vector<8x32xf32>, vector<8x32xf32> -> vector<8x64xf32>
    %cst_33 = arith.constant dense<0.000000e+00> : vector<8x128xf32>
    %262 = tpu.matmul %261, %4, %cst_33 {dimension_numbers = #tpu.dot_dimension_numbers<[1], [0], [0], [1], [0, 0, 1, 1], [], []>} : vector<8x64xf32>, vector<64x128xf32>, vector<8x128xf32> -> vector<8x128xf32>
    %263 = arith.addf %262, %16 : vector<8x128xf32>
    %264 = arith.mulf %263, %7 : vector<8x128xf32>
    %265 = math.tanh %264 : vector<8x128xf32>
    %266 = arith.mulf %265, %10 : vector<8x128xf32>
    %267 = arith.addf %266, %13 : vector<8x128xf32>
    %268 = vector.extract_strided_slice %267 {offsets = [0, 0], sizes = [8, 32], strides = [1, 1]} : vector<8x128xf32> to vector<8x32xf32>
    %269 = vector.extract_strided_slice %267 {offsets = [0, 32], sizes = [8, 32], strides = [1, 1]} : vector<8x128xf32> to vector<8x32xf32>
    %270 = vector.extract_strided_slice %267 {offsets = [0, 64], sizes = [8, 32], strides = [1, 1]} : vector<8x128xf32> to vector<8x32xf32>
    %271 = vector.extract_strided_slice %267 {offsets = [0, 96], sizes = [8, 32], strides = [1, 1]} : vector<8x128xf32> to vector<8x32xf32>
    %272 = arith.mulf %269, %242 : vector<8x32xf32>
    %273 = arith.mulf %268, %270 : vector<8x32xf32>
    %274 = arith.addf %272, %273 : vector<8x32xf32>
    %275 = math.tanh %274 : vector<8x32xf32>
    %276 = arith.mulf %271, %275 : vector<8x32xf32>
    %c0_34 = arith.constant 0 : index
    %c0_35 = arith.constant 0 : index
    %277 = vector.load %arg9[%c0_34, %c0_35] : memref<1x32xf32, #tpu.memory_space<vmem>>, vector<1x32xf32>
    %278 = vector.broadcast %277 : vector<1x32xf32> to vector<8x32xf32>
    %279 = arith.mulf %276, %278 : vector<8x32xf32>
    %cst_36 = arith.constant dense<0.000000e+00> : vector<8xf32>
    %280 = vector.multi_reduction <add>, %279, %cst_36 [1] : vector<8x32xf32> to vector<8xf32>
    %281 = vector.shape_cast %280 : vector<8xf32> to vector<8x1xf32>
    %c0_37 = arith.constant 0 : index
    %c0_38 = arith.constant 0 : index
    %282 = vector.load %arg10[%c0_37, %c0_38] : memref<1x1xf32, #tpu.memory_space<vmem>>, vector<1x1xf32>
    %283 = vector.broadcast %282 : vector<1x1xf32> to vector<8x1xf32>
    %284 = arith.addf %281, %283 : vector<8x1xf32>
    %c0_39 = arith.constant 0 : index
    %c0_40 = arith.constant 0 : index
    %285 = vector.load %arg11[%c0_39, %c0_40] : memref<8x1xf32, #tpu.memory_space<vmem>>, vector<8x1xf32>
    tpu.vector_store %arg11[%c0_39, %c0_40], %284 {strides = array<i32>} : memref<8x1xf32, #tpu.memory_space<vmem>>, vector<8x1xf32>,
    return
  }
}

</mosaic_0001>

<bundles_post_ra>
// kernel: lstm_network_forward.1
= control target key start
LH: loop header
LB: loop body
LE: loop exit
PB: predicated region body
PF: predicated region fallthrough
CT: control target
= control target key end

     0   :  { %s1831_s0 = inlined_call_operand.vmem [shape: f32[8,128], index: 0, kind: input, shape index: {}]   ;;  %s1832_s1 = inlined_call_operand.hbm [shape: f32[128,1024], index: 1, kind: input, shape index: {}]   ;;  %s1833_s2 = inlined_call_operand.vmem [shape: f32[1,1024], index: 2, kind: input, shape index: {}]   ;;  %s1834_s3 = inlined_call_operand.hbm [shape: f32[32,128], index: 3, kind: input, shape index: {}]   ;;  %s1835_s4 = inlined_call_operand.vmem [shape: f32[64,128], index: 4, kind: input, shape index: {}]   ;;  %s1836_s5 = inlined_call_operand.vmem [shape: f32[1,128], index: 5, kind: input, shape index: {}]   ;;  %s1837_s6 = inlined_call_operand.vmem [shape: f32[1,128], index: 6, kind: input, shape index: {}]   ;;  %s1838_s7 = inlined_call_operand.vmem [shape: f32[1,128], index: 7, kind: input, shape index: {}]   ;;  %s1839_s8 = inlined_call_operand.vmem [shape: f32[1,128], index: 8, kind: input, shape index: {}]   ;;  %s1840_s9 = inlined_call_operand.vmem [shape: f32[1,32], index: 9, kind: input, shape index: {}]   ;;  %s1841_s10 = inlined_call_operand.<no memory space> [shape: f32[1,1], index: 10, kind: input, shape index: {}]   ;;  %s1842_s11 = inlined_call_operand.vmem [shape: f32[8,1], index: 11, kind: output, shape index: {}]  }
   0x1   :  { %v16_v0 = vstv %s1841_s10 }
   0x2   :  { %17 = vst [vmem:[#allocation2] sm:$0x1] %v16_v0 }
   0x3   :  { %18 = vsyncpa [#allocation4], 0  ;;  %s26_s21 = sshll.u32 %s1832_s1, 4  ;;  %s27_s21 = int_to_ptr.hbm [resolvable:$true] %s26_s21 }
   0x4   :  { %19 = vsyncpa [#allocation6], 0  ;;  %s1359_s22 = smov [#allocation3]   ;;  %s41_s26 = sshll.u32 %s1834_s3, 4  ;;  %s42_s26 = int_to_ptr.hbm [resolvable:$true] %s41_s26 }
   0x5   :  { %s28_s23 = sshll.u32 %s1359_s22, 4  ;;  %s1360_s27 = smov 1024   ;;  %s29_s23 = int_to_ptr.vmem [resolvable:$true] %s28_s23 }
   0x6   :  { %s1361_s28 = smov 64   ;;  %s1362_s10 = smov [#allocation5]  }
   0x7   :  { %34 = dma.hbm_to_vmem [thread:$0]  %s27_s21, 16384, %s29_s23, [#allocation4], %s1360_s27, %s1360_s27, %s1361_s28  }
   0x8   :  { %s43_s29 = sshll.u32 %s1362_s10, 4  ;;  %s1363_s30 = smov 128   ;;  %s44_s29 = int_to_ptr.vmem [resolvable:$true] %s43_s29 }
   0x9   :  { %s1364_s12 = smov 8  }
   0xa   :  { %49 = dma.hbm_to_vmem [thread:$0]  %s42_s26, 512, %s44_s29, [#allocation6], %s1363_s30, %s1363_s30, %s1364_s12  }
   0xb   :  { %1355 = dma.done.wait [#allocation4], 16384  }
   0xc   :  { %1356 = vsyncadd [#allocation4], 4294950912 }
   0xd   :  { %1357 = dma.done.wait [#allocation6], 512  }
   0xe   :  { %1358 = vsyncadd [#allocation6], 4294966784  ;;  %v193_v1 = vld [vmem:[#allocation3 + $0x3c0] sm:$0xff]  ;;  %v1444_v34 = vld [vmem:[#allocation5 + $0x18] sm:$0xff]  ;;  %v1365_v38 = vmov 0.0   ;;  %s1366_s20 = smov 32  }
   0xf   :  { %v185_v2 = vld [vmem:[#allocation3 + $0x380] sm:$0xff]  ;;  %247 = vmatpush.msra.mxu0 %v193_v1  ;;  %v1447_v35 = vld [vmem:[#allocation5 + $0x10] sm:$0xff]  ;;  %v1450_v36 = vld [vmem:[#allocation5 + $0x8] sm:$0xff]  ;;  %vm407_vm0 = vcmask 261120   ;;  %vm458_vm1 = vcmask 523264   ;;  %s1367_s22 = smov 96  }
  0x10   :  { %v177_v3 = vld [vmem:[#allocation3 + $0x340] sm:$0xff]  ;;  %v1476_v44 = vld [vmem:[%s1837_s6] ss:$0 sm:$0xff]  ;;  %v194_v59 = vld [vmem:[#allocation3 + $0x3c8] sm:$0xff]  ;;  %vm1201_vm2 = vcmask 7168  }
  0x11   :  { %248 = vmatpush.msra.mxu0 %v185_v2  ;;  %v169_v4 = vld [vmem:[#allocation3 + $0x300] sm:$0xff]  ;;  %v1482_v48 = vld [vmem:[%s1838_s7] ss:$0 sm:$0xff]  ;;  %v186_v60 = vld [vmem:[#allocation3 + $0x388] sm:$0xff]  ;;  %267 = vmatpush.msra.mxu1 %v194_v59 }
  0x12   :  { %v161_v5 = vld [vmem:[#allocation3 + $0x2c0] sm:$0xff]  ;;  %v1487_v49 = vld [vmem:[%s1839_s8] ss:$0 sm:$0xff]  ;;  %v195_v61 = vld [vmem:[#allocation3 + $0x3d0] sm:$0xff] }
  0x13   :  { %249 = vmatpush.msra.mxu0 %v177_v3  ;;  %v153_v6 = vld [vmem:[#allocation3 + $0x280] sm:$0xff]  ;;  %v178_v62 = vld [vmem:[#allocation3 + $0x348] sm:$0xff]  ;;  %287 = vmatpush.msra.mxu2 %v195_v61  ;;  %v187_v63 = vld [vmem:[#allocation3 + $0x390] sm:$0xff] }
  0x14   :  { %v145_v7 = vld [vmem:[#allocation3 + $0x240] sm:$0xff]  ;;  %268 = vmatpush.msra.mxu1 %v186_v60  ;;  %v179_v0 = vld [vmem:[#allocation3 + $0x350] sm:$0xff]  ;;  %v170_v1 = vld [vmem:[#allocation3 + $0x308] sm:$0xff] }
  0x15   :  { %250 = vmatpush.msra.mxu0 %v169_v4  ;;  %v137_v8 = vld [vmem:[#allocation3 + $0x200] sm:$0xff]  ;;  %288 = vmatpush.msra.mxu2 %v187_v63  ;;  %v171_v2 = vld [vmem:[#allocation3 + $0x310] sm:$0xff]  ;;  %v162_v3 = vld [vmem:[#allocation3 + $0x2c8] sm:$0xff] }
  0x16   :  { %v129_v9 = vld [vmem:[#allocation3 + $0x1c0] sm:$0xff]  ;;  %269 = vmatpush.msra.mxu1 %v178_v62  ;;  %v163_v4 = vld [vmem:[#allocation3 + $0x2d0] sm:$0xff]  ;;  %v118_v59 = vld [vmem:[#allocation3 + $0x168] sm:$0xff] }
  0x17   :  { %251 = vmatpush.msra.mxu0 %v161_v5  ;;  %v121_v10 = vld [vmem:[#allocation3 + $0x180] sm:$0xff]  ;;  %289 = vmatpush.msra.mxu2 %v179_v0  ;;  %v154_v5 = vld [vmem:[#allocation3 + $0x288] sm:$0xff]  ;;  %v127_v60 = vld [vmem:[#allocation3 + $0x1b0] sm:$0xff] }
  0x18   :  { %v113_v11 = vld [vmem:[#allocation3 + $0x140] sm:$0xff]  ;;  %270 = vmatpush.msra.mxu1 %v170_v1  ;;  %v110_v61 = vld [vmem:[#allocation3 + $0x128] sm:$0xff]  ;;  %v119_v62 = vld [vmem:[#allocation3 + $0x170] sm:$0xff] }
  0x19   :  { %252 = vmatpush.msra.mxu0 %v153_v6  ;;  %v105_v12 = vld [vmem:[#allocation3 + $0x100] sm:$0xff]  ;;  %290 = vmatpush.msra.mxu2 %v171_v2  ;;  %v155_v6 = vld [vmem:[#allocation3 + $0x290] sm:$0xff]  ;;  %v102_v63 = vld [vmem:[#allocation3 + $0xe8] sm:$0xff] }
  0x1a   :  { %v97_v13 = vld [vmem:[#allocation3 + $0xc0] sm:$0xff]  ;;  %271 = vmatpush.msra.mxu1 %v162_v3  ;;  %v111_v0 = vld [vmem:[#allocation3 + $0x130] sm:$0xff]  ;;  %v94_v1 = vld [vmem:[#allocation3 + $0xa8] sm:$0xff] }
  0x1b   :  { %253 = vmatpush.msra.mxu0 %v145_v7  ;;  %v89_v14 = vld [vmem:[#allocation3 + $0x80] sm:$0xff]  ;;  %v146_v7 = vld [vmem:[#allocation3 + $0x248] sm:$0xff]  ;;  %291 = vmatpush.msra.mxu2 %v163_v4  ;;  %v103_v2 = vld [vmem:[#allocation3 + $0xf0] sm:$0xff] }
  0x1c   :  { %v81_v15 = vld [vmem:[#allocation3 + $0x40] sm:$0xff]  ;;  %272 = vmatpush.msra.mxu1 %v154_v5  ;;  %v86_v3 = vld [vmem:[#allocation3 + $0x68] sm:$0xff]  ;;  %v95_v4 = vld [vmem:[#allocation3 + $0xb0] sm:$0xff] }
  0x1d   :  { %254 = vmatpush.msra.mxu0 %v137_v8  ;;  %v73_v16 = vld [vmem:[#allocation3] sm:$0xff]  ;;  %v147_v8 = vld [vmem:[#allocation3 + $0x250] sm:$0xff]  ;;  %292 = vmatpush.msra.mxu2 %v155_v6  ;;  %v78_v5 = vld [vmem:[#allocation3 + $0x28] sm:$0xff] }
  0x1e   :  { %v197_v17 = vld [vmem:[#allocation3 + $0x3e0] sm:$0xff]  ;;  %273 = vmatpush.msra.mxu1 %v146_v7  ;;  %v87_v6 = vld [vmem:[#allocation3 + $0x70] sm:$0xff] }
  0x1f   :  { %255 = vmatpush.msra.mxu0 %v129_v9  ;;  %v1441_v18 = vld [vmem:[%s1831_s0] sm:$0xff]  ;;  %v138_v9 = vld [vmem:[#allocation3 + $0x208] sm:$0xff]  ;;  %293 = vmatpush.msra.mxu2 %v147_v8  ;;  %v1509_v7 = vld [vmem:[%s1835_s4 + $0x38] sm:$0xff] }
  0x20   :  { %v189_v19 = vld [vmem:[#allocation3 + $0x3a0] sm:$0xff]  ;;  %274 = vmatpush.msra.mxu1 %v138_v9  ;;  %v79_v8 = vld [vmem:[#allocation3 + $0x30] sm:$0xff] }
  0x21   :  { %256 = vmatpush.msra.mxu0 %v121_v10  ;;  %v181_v20 = vld [vmem:[#allocation3 + $0x360] sm:$0xff]  ;;  %v139_v10 = vld [vmem:[#allocation3 + $0x210] sm:$0xff] }
  0x22   :  { %v173_v21 = vld [vmem:[#allocation3 + $0x320] sm:$0xff]  ;;  %294 = vmatpush.msra.mxu2 %v139_v10  ;;  %v1514_v9 = vld [vmem:[%s1835_s4 + $0x30] sm:$0xff] }
  0x23   :  { %257 = vmatpush.msra.mxu0 %v113_v11  ;;  %v165_v22 = vld [vmem:[#allocation3 + $0x2e0] sm:$0xff]  ;;  %v130_v11 = vld [vmem:[#allocation3 + $0x1c8] sm:$0xff] }
  0x24   :  { %v157_v23 = vld [vmem:[#allocation3 + $0x2a0] sm:$0xff]  ;;  %275 = vmatpush.msra.mxu1 %v130_v11 }
  0x25   :  { %258 = vmatpush.msra.mxu0 %v105_v12  ;;  %v149_v24 = vld [vmem:[#allocation3 + $0x260] sm:$0xff]  ;;  %v131_v12 = vld [vmem:[#allocation3 + $0x1d0] sm:$0xff] }
  0x26   :  { %v141_v25 = vld [vmem:[#allocation3 + $0x220] sm:$0xff]  ;;  %295 = vmatpush.msra.mxu2 %v131_v12  ;;  %v1535_v12 = vld [vmem:[%s1835_s4 + $0x18] sm:$0xff] }
  0x27   :  { %259 = vmatpush.msra.mxu0 %v97_v13  ;;  %v133_v26 = vld [vmem:[#allocation3 + $0x1e0] sm:$0xff]  ;;  %v122_v13 = vld [vmem:[#allocation3 + $0x188] sm:$0xff] }
  0x28   :  { %v125_v27 = vld [vmem:[#allocation3 + $0x1a0] sm:$0xff]  ;;  %276 = vmatpush.msra.mxu1 %v122_v13  ;;  %v1542_v13 = vld [vmem:[%s1835_s4 + $0x10] sm:$0xff] }
  0x29   :  { %260 = vmatpush.msra.mxu0 %v89_v14  ;;  %v117_v28 = vld [vmem:[#allocation3 + $0x160] sm:$0xff]  ;;  %v123_v14 = vld [vmem:[#allocation3 + $0x190] sm:$0xff] }
  0x2a   :  { %v109_v29 = vld [vmem:[#allocation3 + $0x120] sm:$0xff]  ;;  %296 = vmatpush.msra.mxu2 %v123_v14 }
  0x2b   :  { %261 = vmatpush.msra.mxu0 %v81_v15  ;;  %v101_v30 = vld [vmem:[#allocation3 + $0xe0] sm:$0xff]  ;;  %v114_v15 = vld [vmem:[#allocation3 + $0x148] sm:$0xff] }
  0x2c   :  { %v93_v31 = vld [vmem:[#allocation3 + $0xa0] sm:$0xff]  ;;  %277 = vmatpush.msra.mxu1 %v114_v15 }
  0x2d   :  { %262 = vmatpush.msra.mxu0 %v73_v16  ;;  %v85_v32 = vld [vmem:[#allocation3 + $0x60] sm:$0xff]  ;;  %v115_v16 = vld [vmem:[#allocation3 + $0x150] sm:$0xff] }
  0x2e   :  { %263 = vmatmul.f32.vlgmr.msra.gmra.mxu0 %v1441_v18  ;;  %v77_v33 = vld [vmem:[#allocation3 + $0x20] sm:$0xff]  ;;  %297 = vmatpush.msra.mxu2 %v115_v16 }
  0x2f   :  { %327 = vmatpush.msrb.mxu0 %v197_v17  ;;  %v1453_v37 = vld [vmem:[#allocation5] sm:$0xff]  ;;  %v106_v17 = vld [vmem:[#allocation3 + $0x108] sm:$0xff] }
  0x30   :  { %v1468_v40 = vld [vmem:[%s1833_s2] sm:$0xff]  ;;  %278 = vmatpush.msra.mxu1 %v106_v17  ;;  %v1520_v10 = vld [vmem:[%s1835_s4 + $0x28] sm:$0xff] }
  0x31   :  { %328 = vmatpush.msrb.mxu0 %v189_v19  ;;  %v231_v42 = vperm.slane %v1468_v40, 0  ;;  %v107_v19 = vld [vmem:[#allocation3 + $0x110] sm:$0xff]  ;;  %v1528_v11 = vld [vmem:[%s1835_s4 + $0x20] sm:$0xff]  ;;  %v1549_v14 = vld [vmem:[%s1835_s4 + $0x8] sm:$0xff] }
  0x32   :  { %298 = vmatpush.msra.mxu2 %v107_v19  ;;  %v1564_v15 = vld [vmem:[%s1835_s4] sm:$0xff] }
  0x33   :  { %329 = vmatpush.msrb.mxu0 %v181_v20  ;;  %v98_v20 = vld [vmem:[#allocation3 + $0xc8] sm:$0xff] }
  0x34   :  { %279 = vmatpush.msra.mxu1 %v98_v20 }
  0x35   :  { %330 = vmatpush.msrb.mxu0 %v173_v21  ;;  %v99_v21 = vld [vmem:[#allocation3 + $0xd0] sm:$0xff] }
  0x36   :  { %299 = vmatpush.msra.mxu2 %v99_v21 }
  0x37   :  { %331 = vmatpush.msrb.mxu0 %v165_v22  ;;  %v90_v22 = vld [vmem:[#allocation3 + $0x88] sm:$0xff] }
  0x38   :  { %280 = vmatpush.msra.mxu1 %v90_v22 }
  0x39   :  { %332 = vmatpush.msrb.mxu0 %v157_v23  ;;  %v91_v23 = vld [vmem:[#allocation3 + $0x90] sm:$0xff] }
  0x3a   :  { %300 = vmatpush.msra.mxu2 %v91_v23  ;;  %v1600_v23 = vld [vmem:[%s1836_s5] ss:$0 sm:$0xff] }
  0x3b   :  { %333 = vmatpush.msrb.mxu0 %v149_v24  ;;  %v82_v24 = vld [vmem:[#allocation3 + $0x48] sm:$0xff] }
  0x3c   :  { %281 = vmatpush.msra.mxu1 %v82_v24  ;;  %v232_v24 = vperm.slane %v1468_v40, 1 }
  0x3d   :  { %334 = vmatpush.msrb.mxu0 %v141_v25  ;;  %v83_v25 = vld [vmem:[#allocation3 + $0x50] sm:$0xff] }
  0x3e   :  { %301 = vmatpush.msra.mxu2 %v83_v25 }
  0x3f   :  { %335 = vmatpush.msrb.mxu0 %v133_v26  ;;  %v74_v26 = vld [vmem:[#allocation3 + $0x8] sm:$0xff] }
  0x40   :  { %282 = vmatpush.msra.mxu1 %v74_v26 }
  0x41   :  { %336 = vmatpush.msrb.mxu0 %v125_v27  ;;  %283 = vmatmul.f32.vlgmr.msra.gmra.mxu1 %v1441_v18 }
  0x43   :  { %337 = vmatpush.msrb.mxu0 %v117_v28  ;;  %v198_v28 = vld [vmem:[#allocation3 + $0x3e8] sm:$0xff] }
  0x44   :  { %347 = vmatpush.msrb.mxu1 %v198_v28 }
  0x45   :  { %338 = vmatpush.msrb.mxu0 %v109_v29 }
  0x47   :  { %339 = vmatpush.msrb.mxu0 %v101_v30  ;;  %v75_v30 = vld [vmem:[#allocation3 + $0x10] sm:$0xff] }
  0x48   :  { %302 = vmatpush.msra.mxu2 %v75_v30 }
  0x49   :  { %340 = vmatpush.msrb.mxu0 %v93_v31  ;;  %v190_v31 = vld [vmem:[#allocation3 + $0x3a8] sm:$0xff]  ;;  %303 = vmatmul.f32.vlgmr.msra.gmra.mxu2 %v1441_v18 }
  0x4a   :  { %348 = vmatpush.msrb.mxu1 %v190_v31 }
  0x4b   :  { %341 = vmatpush.msrb.mxu0 %v85_v32  ;;  %v199_v32 = vld [vmem:[#allocation3 + $0x3f0] sm:$0xff] }
  0x4c   :  { %367 = vmatpush.msrb.mxu2 %v199_v32 }
  0x4d   :  { %342 = vmatpush.msrb.mxu0 %v77_v33  ;;  %v182_v33 = vld [vmem:[#allocation3 + $0x368] sm:$0xff] }
  0x4e   :  { %343 = vmatmul.f32.vlgmr.msrb.gmra.mxu0 %v1441_v18  ;;  %349 = vmatpush.msrb.mxu1 %v182_v33 }
  0x4f   :  { %423 = vmatpush.msra.mxu0 %v1444_v34 }
  0x51   :  { %424 = vmatpush.msra.mxu0 %v1447_v35 }
  0x53   :  { %425 = vmatpush.msra.mxu0 %v1450_v36 }
  0x55   :  { %426 = vmatpush.msra.mxu0 %v1453_v37 }
  0x56   :  { %427 = vmatmul.f32.vlgmr.msra.gmra.mxu0 %v1365_v38  ;;  %v191_v38 = vld [vmem:[#allocation3 + $0x3b0] sm:$0xff] }
  0x57   :  { %614 = vmatpush.msrb.mxu0 %v1444_v34  ;;  %368 = vmatpush.msrb.mxu2 %v191_v38 }
  0x59   :  { %615 = vmatpush.msrb.mxu0 %v1447_v35 }
  0x5b   :  { %616 = vmatpush.msrb.mxu0 %v1450_v36 }
  0x5d   :  { %617 = vmatpush.msrb.mxu0 %v1453_v37 }
  0x5f   :  { %711 = vmatpush.msra.mxu0 %v1444_v34 }
  0x61   :  { %712 = vmatpush.msra.mxu0 %v1447_v35 }
  0x63   :  { %713 = vmatpush.msra.mxu0 %v1450_v36 }
  0x65   :  { %714 = vmatpush.msra.mxu0 %v1453_v37 }
  0xab   :  { %v264_v39 = vpop.f32.mrf.mxu0 }
  0xac   :  { %v265_v43 = vadd.f32 %v264_v39, %v231_v42  ;;  %v174_v39 = vld [vmem:[#allocation3 + $0x328] sm:$0xff]  ;;  %v183_v42 = vld [vmem:[#allocation3 + $0x370] sm:$0xff] }
  0xad   :  { %350 = vmatpush.msrb.mxu1 %v174_v39  ;;  %369 = vmatpush.msrb.mxu2 %v183_v42 }
  0xbe   :  { %v284_v19 = vpop.f32.mrf.mxu1 }
  0xbf   :  { %v285_v28 = vadd.f32 %v284_v19, %v232_v24  ;;  %v108_v19 = vld [vmem:[#allocation3 + $0x118] sm:$0xff] }
  0xc0   :  { %v100_v24 = vld [vmem:[#allocation3 + $0xd8] sm:$0xff] }
  0xcb   :  { %v1470_v41 = vpop.f32.mrf.mxu0 }
  0xcc   :  { %v1591_v20 = vpop.f32.mrf.mxu2 }
  0xd3   :  { %v428_v45 = vpop.f32.mrf.mxu0 }
  0xd4   :  { %v431_v46 = vadd.f32 %v428_v45, %v265_v43  ;;  %v166_v43 = vld [vmem:[#allocation3 + $0x2e8] sm:$0xff]  ;;  %v175_v45 = vld [vmem:[#allocation3 + $0x330] sm:$0xff] }
  0xd5   :  { %351 = vmatpush.msrb.mxu1 %v166_v43  ;;  %370 = vmatpush.msrb.mxu2 %v175_v45 }
  0xd6   :  { %v432_v47 = vmul.f32 %v1476_v44, %v431_v46  ;;  %v158_v46 = vld [vmem:[#allocation3 + $0x2a8] sm:$0xff] }
  0xd7   :  { %352 = vmatpush.msrb.mxu1 %v158_v46 }
  0xd8   :  { %1239 = vtanh.f32 %v432_v47  ;;  %v167_v47 = vld [vmem:[#allocation3 + $0x2f0] sm:$0xff] }
  0xd9   :  { %371 = vmatpush.msrb.mxu2 %v167_v47 }
  0xde   :  { %v1240_v50 = vpop.eup %1239 }
  0xdf   :  { %v434_v51 = vmul.f32 %v1240_v50, %v1482_v48  ;;  %v150_v50 = vld [vmem:[#allocation3 + $0x268] sm:$0xff] }
  0xe0   :  { %353 = vmatpush.msrb.mxu1 %v150_v50 }
  0xe1   :  { %v1491_v52 = vadd.f32 %v1487_v49, %v434_v51  ;;  %v159_v51 = vld [vmem:[#allocation3 + $0x2b0] sm:$0xff] }
  0xe2   :  { %372 = vmatpush.msrb.mxu2 %v159_v51 }
  0xe3   :  { %438 = vrot.lane.b32.xlu0 %v1491_v52, %s1361_s28  ;;  %v436_v55 = vmul.f32 0.0, %v1491_v52 }
 0x155   :  { %v439_v53 = vpop.permute.xlu0 %438 }
 0x156   :  { %v441_v54 = vmul.f32 %v439_v53, %v1491_v52  ;;  %v151_v53 = vld [vmem:[#allocation3 + $0x270] sm:$0xff] }
 0x157   :  { %373 = vmatpush.msrb.mxu2 %v151_v53 }
 0x158   :  { %443 = vrot.lane.b32.xlu0 %v441_v54, %s1366_s20  ;;  %v134_v54 = vld [vmem:[#allocation3 + $0x1e8] sm:$0xff] }
 0x1ca   :  { %v444_v56 = vpop.permute.xlu0 %443 }
 0x1cb   :  { %v1498_v57 = vadd.f32 %v444_v56, %v436_v55  ;;  %v143_v55 = vld [vmem:[#allocation3 + $0x230] sm:$0xff]  ;;  %v126_v56 = vld [vmem:[#allocation3 + $0x1a8] sm:$0xff] }
 0x1cc   :  { %374 = vmatpush.msrb.mxu2 %v143_v55 }
 0x1cd   :  { %1241 = vtanh.f32 %v1498_v57 }
 0x1d3   :  { %v1242_v58 = vpop.eup %1241 }
 0x1d4   :  { %449 = vrot.lane.b32.xlu1 %v1242_v58, %s1361_s28  ;;  %v135_v58 = vld [vmem:[#allocation3 + $0x1f0] sm:$0xff] }
 0x1d5   :  { %375 = vmatpush.msrb.mxu2 %v135_v58 }
 0x1d7   :  { %376 = vmatpush.msrb.mxu2 %v127_v60 }
 0x1d9   :  { %377 = vmatpush.msrb.mxu2 %v119_v62  ;;  %v196_v62 = vld [vmem:[#allocation3 + $0x3d8] sm:$0xff] }
 0x1da   :  { %307 = vmatpush.msra.mxu3 %v196_v62 }
 0x1db   :  { %378 = vmatpush.msrb.mxu2 %v111_v0  ;;  %v180_v0 = vld [vmem:[#allocation3 + $0x358] sm:$0xff] }
 0x1dd   :  { %379 = vmatpush.msrb.mxu2 %v103_v2  ;;  %v156_v2 = vld [vmem:[#allocation3 + $0x298] sm:$0xff] }
 0x1df   :  { %380 = vmatpush.msrb.mxu2 %v95_v4  ;;  %v140_v4 = vld [vmem:[#allocation3 + $0x218] sm:$0xff] }
 0x1e1   :  { %381 = vmatpush.msrb.mxu2 %v87_v6  ;;  %v124_v6 = vld [vmem:[#allocation3 + $0x198] sm:$0xff] }
 0x1e3   :  { %382 = vmatpush.msrb.mxu2 %v79_v8 }
 0x1e4   :  { %383 = vmatmul.f32.vlgmr.msrb.gmra.mxu2 %v1441_v18 }
 0x1e5   :  { %517 = vmatpush.msra.mxu2 %v1444_v34 }
 0x1e7   :  { %518 = vmatpush.msra.mxu2 %v1447_v35 }
 0x1e9   :  { %519 = vmatpush.msra.mxu2 %v1450_v36 }
 0x1eb   :  { %520 = vmatpush.msra.mxu2 %v1453_v37 }
 0x1ed   :  { %664 = vmatpush.msrb.mxu2 %v1509_v7 }
 0x1ef   :  { %665 = vmatpush.msrb.mxu2 %v1514_v9 }
 0x1f1   :  { %666 = vmatpush.msrb.mxu2 %v1520_v10 }
 0x1f3   :  { %667 = vmatpush.msrb.mxu2 %v1528_v11 }
 0x1f5   :  { %668 = vmatpush.msrb.mxu2 %v1535_v12 }
 0x1f7   :  { %669 = vmatpush.msrb.mxu2 %v1542_v13 }
 0x1f9   :  { %670 = vmatpush.msrb.mxu2 %v1549_v14 }
 0x1fb   :  { %671 = vmatpush.msrb.mxu2 %v1564_v15 }
 0x246   :  { %v450_v27 = vpop.permute.xlu1 %449 }
 0x247   :  { %v452_v29 = vmul.f32 %v450_v27, %v1491_v52  ;;  %v142_v52 = vld [vmem:[#allocation3 + $0x228] sm:$0xff] }
 0x248   :  { %354 = vmatpush.msrb.mxu1 %v142_v52 }
 0x249   :  { %454 = vrot.lane.b32.xlu1 %v452_v29, %s1366_s20 }
 0x24a   :  { %355 = vmatpush.msrb.mxu1 %v134_v54 }
 0x24c   :  { %356 = vmatpush.msrb.mxu1 %v126_v56 }
 0x24e   :  { %357 = vmatpush.msrb.mxu1 %v118_v59 }
 0x250   :  { %358 = vmatpush.msrb.mxu1 %v110_v61 }
 0x252   :  { %359 = vmatpush.msrb.mxu1 %v102_v63  ;;  %v188_v63 = vld [vmem:[#allocation3 + $0x398] sm:$0xff] }
 0x253   :  { %308 = vmatpush.msra.mxu3 %v188_v63 }
 0x254   :  { %360 = vmatpush.msrb.mxu1 %v94_v1  ;;  %v164_v1 = vld [vmem:[#allocation3 + $0x2d8] sm:$0xff] }
 0x255   :  { %309 = vmatpush.msra.mxu3 %v180_v0 }
 0x256   :  { %361 = vmatpush.msrb.mxu1 %v86_v3  ;;  %v148_v3 = vld [vmem:[#allocation3 + $0x258] sm:$0xff] }
 0x258   :  { %362 = vmatpush.msrb.mxu1 %v78_v5  ;;  %v132_v5 = vld [vmem:[#allocation3 + $0x1d8] sm:$0xff] }
 0x259   :  { %363 = vmatmul.f32.vlgmr.msrb.gmra.mxu1 %v1441_v18 }
 0x25a   :  { %470 = vmatpush.msra.mxu1 %v1509_v7 }
 0x25c   :  { %471 = vmatpush.msra.mxu1 %v1514_v9 }
 0x25e   :  { %472 = vmatpush.msra.mxu1 %v1520_v10 }
 0x260   :  { %473 = vmatpush.msra.mxu1 %v1528_v11 }
 0x262   :  { %474 = vmatpush.msra.mxu1 %v1535_v12 }
 0x264   :  { %475 = vmatpush.msra.mxu1 %v1542_v13 }
 0x266   :  { %476 = vmatpush.msra.mxu1 %v1549_v14 }
 0x267   :  { %v1595_v22 = vpop.f32.mrf.mxu2 }
 0x268   :  { %477 = vmatpush.msra.mxu1 %v1564_v15 }
 0x26a   :  { %761 = vmatpush.msrb.mxu1 %v1509_v7 }
 0x26c   :  { %762 = vmatpush.msrb.mxu1 %v1514_v9 }
 0x26e   :  { %763 = vmatpush.msrb.mxu1 %v1520_v10 }
 0x270   :  { %764 = vmatpush.msrb.mxu1 %v1528_v11 }
 0x272   :  { %765 = vmatpush.msrb.mxu1 %v1535_v12 }
 0x274   :  { %766 = vmatpush.msrb.mxu1 %v1542_v13 }
 0x276   :  { %767 = vmatpush.msrb.mxu1 %v1549_v14 }
 0x278   :  { %768 = vmatpush.msrb.mxu1 %v1564_v15 }
 0x2bb   :  { %v455_v16 = vpop.permute.xlu1 %454 }
 0x2bc   :  { %v457_v17 = vsel %vm407_vm0, %v455_v16, 0.0  ;;  %1210 = vmatmul.msk.f32.vlgmr.msra.gmra.mxu2 %vm407_vm0, %v455_v16 }
 0x2bd   :  { %1209 = vmatmul.msk.f32.vlgmr.msra.gmra.mxu1 %vm458_vm1, %v457_v17  ;;  %905 = vmatpush.msra.mxu2 %v1444_v34  ;;  %v116_v17 = vld [vmem:[#allocation3 + $0x158] sm:$0xff] }
 0x2be   :  { %1149 = vmatpush.msra.mxu1 %v1509_v7 }
 0x2bf   :  { %906 = vmatpush.msra.mxu2 %v1447_v35 }
 0x2c0   :  { %1150 = vmatpush.msra.mxu1 %v1514_v9 }
 0x2c1   :  { %907 = vmatpush.msra.mxu2 %v1450_v36 }
 0x2c2   :  { %1151 = vmatpush.msra.mxu1 %v1520_v10 }
 0x2c3   :  { %908 = vmatpush.msra.mxu2 %v1453_v37 }
 0x2c4   :  { %1152 = vmatpush.msra.mxu1 %v1528_v11 }
 0x2c6   :  { %1153 = vmatpush.msra.mxu1 %v1535_v12 }
 0x2c8   :  { %1154 = vmatpush.msra.mxu1 %v1542_v13 }
 0x2ca   :  { %1155 = vmatpush.msra.mxu1 %v1549_v14 }
 0x2cc   :  { %1156 = vmatpush.msra.mxu1 %v1564_v15 }
 0x2d6   :  { %v1593_v21 = vpop.f32.mrf.mxu1 }
 0x33a   :  { %v479_v25 = vpop.f32.mrf.mxu1 }
 0x33b   :  { %v480_v26 = vadd.f32 %v1600_v23, %v479_v25  ;;  %v92_v25 = vld [vmem:[#allocation3 + $0x98] sm:$0xff] }
 0x33d   :  { %v482_v27 = vmul.f32 %v1476_v44, %v480_v26  ;;  %v84_v26 = vld [vmem:[#allocation3 + $0x58] sm:$0xff] }
 0x33f   :  { %1243 = vtanh.f32 %v482_v27  ;;  %v522_v29 = vpop.f32.mrf.mxu2  ;;  %v76_v27 = vld [vmem:[#allocation3 + $0x18] sm:$0xff] }
 0x340   :  { %v525_v30 = vadd.f32 %v522_v29, %v285_v28  ;;  %v200_v28 = vld [vmem:[#allocation3 + $0x3f8] sm:$0xff] }
 0x341   :  { %v192_v29 = vld [vmem:[#allocation3 + $0x3b8] sm:$0xff] }
 0x342   :  { %v526_v31 = vmul.f32 %v1476_v44, %v525_v30  ;;  %v184_v30 = vld [vmem:[#allocation3 + $0x378] sm:$0xff] }
 0x344   :  { %1245 = vtanh.f32 %v526_v31  ;;  %v176_v31 = vld [vmem:[#allocation3 + $0x338] sm:$0xff] }
 0x345   :  { %v1244_v32 = vpop.eup %1243 }
 0x346   :  { %v484_v33 = vmul.f32 %v1244_v32, %v1482_v48  ;;  %v168_v32 = vld [vmem:[#allocation3 + $0x2f8] sm:$0xff] }
 0x348   :  { %v485_v38 = vadd.f32 %v1487_v49, %v484_v33  ;;  %v160_v33 = vld [vmem:[#allocation3 + $0x2b8] sm:$0xff] }
 0x34a   :  { %v1246_v39 = vpop.eup %1245  ;;  %488 = vrot.lane.b32.xlu2 %v485_v38, %s1361_s28  ;;  %v486_v51 = vmul.f32 0.0, %v485_v38 }
 0x34b   :  { %v528_v42 = vmul.f32 %v1246_v39, %v1482_v48  ;;  %v144_v39 = vld [vmem:[#allocation3 + $0x238] sm:$0xff] }
 0x34d   :  { %v529_v43 = vadd.f32 %v1487_v49, %v528_v42  ;;  %v136_v42 = vld [vmem:[#allocation3 + $0x1f8] sm:$0xff] }
 0x34f   :  { %v530_v54 = vmul.f32 %v529_v43, %v1498_v57  ;;  %v172_v57 = vld [vmem:[#allocation3 + $0x318] sm:$0xff] }
 0x350   :  { %310 = vmatpush.msra.mxu3 %v172_v57 }
 0x352   :  { %532 = vrot.lane.b32.xlu2 %v529_v43, %s1361_s28  ;;  %311 = vmatpush.msra.mxu3 %v164_v1 }
 0x354   :  { %312 = vmatpush.msra.mxu3 %v156_v2 }
 0x356   :  { %313 = vmatpush.msra.mxu3 %v148_v3 }
 0x358   :  { %314 = vmatpush.msra.mxu3 %v140_v4 }
 0x35a   :  { %315 = vmatpush.msra.mxu3 %v132_v5 }
 0x35c   :  { %316 = vmatpush.msra.mxu3 %v124_v6 }
 0x35e   :  { %317 = vmatpush.msra.mxu3 %v116_v17 }
 0x360   :  { %318 = vmatpush.msra.mxu3 %v108_v19 }
 0x362   :  { %319 = vmatpush.msra.mxu3 %v100_v24 }
 0x364   :  { %320 = vmatpush.msra.mxu3 %v92_v25 }
 0x366   :  { %321 = vmatpush.msra.mxu3 %v84_v26 }
 0x368   :  { %322 = vmatpush.msra.mxu3 %v76_v27 }
 0x369   :  { %323 = vmatmul.f32.vlgmr.msra.gmra.mxu3 %v1441_v18 }
 0x36a   :  { %387 = vmatpush.msrb.mxu3 %v200_v28 }
 0x36c   :  { %388 = vmatpush.msrb.mxu3 %v192_v29 }
 0x36e   :  { %389 = vmatpush.msrb.mxu3 %v184_v30 }
 0x370   :  { %390 = vmatpush.msrb.mxu3 %v176_v31 }
 0x372   :  { %391 = vmatpush.msrb.mxu3 %v168_v32 }
 0x374   :  { %392 = vmatpush.msrb.mxu3 %v160_v33 }
 0x3a4   :  { %v489_v45 = vpop.permute.xlu2 %488 }
 0x3a5   :  { %v491_v46 = vmul.f32 %v489_v45, %v485_v38  ;;  %v120_v45 = vld [vmem:[#allocation3 + $0x178] sm:$0xff] }
 0x3a7   :  { %493 = vrot.lane.b32.xlu0 %v491_v46, %s1366_s20  ;;  %v112_v46 = vld [vmem:[#allocation3 + $0x138] sm:$0xff] }
 0x3ac   :  { %v533_v47 = vpop.permute.xlu2 %532 }
 0x3ad   :  { %v535_v50 = vmul.f32 %v533_v47, %v529_v43  ;;  %v104_v47 = vld [vmem:[#allocation3 + $0xf8] sm:$0xff] }
 0x3af   :  { %537 = vrot.lane.b32.xlu1 %v535_v50, %s1366_s20  ;;  %v96_v50 = vld [vmem:[#allocation3 + $0xb8] sm:$0xff] }
 0x419   :  { %v494_v52 = vpop.permute.xlu0 %493 }
 0x41a   :  { %v1614_v53 = vadd.f32 %v494_v52, %v486_v51  ;;  %v88_v51 = vld [vmem:[#allocation3 + $0x78] sm:$0xff] }
 0x41b   :  { %v80_v52 = vld [vmem:[#allocation3 + $0x38] sm:$0xff] }
 0x41c   :  { %1247 = vtanh.f32 %v1614_v53 }
 0x421   :  { %v538_v55 = vpop.permute.xlu1 %537 }
 0x422   :  { %v1248_v56 = vpop.eup %1247  ;;  %v1618_v58 = vadd.f32 %v538_v55, %v530_v54 }
 0x423   :  { %499 = vrot.lane.b32.xlu2 %v1248_v56, %s1361_s28  ;;  %v324_v56 = vpop.f32.mrf.mxu3 }
 0x424   :  { %1249 = vtanh.f32 %v1618_v58 }
 0x42a   :  { %v1250_v59 = vpop.eup %1249 }
 0x42b   :  { %543 = vrot.lane.b32.xlu0 %v1250_v59, %s1361_s28  ;;  %v233_v59 = vperm.slane %v1468_v40, 2 }
 0x47d   :  { %v500_v60 = vpop.permute.xlu2 %499 }
 0x47e   :  { %v502_v61 = vmul.f32 %v500_v60, %v485_v38  ;;  %v152_v38 = vld [vmem:[#allocation3 + $0x278] sm:$0xff] }
 0x47f   :  { %393 = vmatpush.msrb.mxu3 %v152_v38 }
 0x480   :  { %552 = vrot.lane.b32.xlu2 %v502_v61, %s1361_s28  ;;  %v305_v61 = vadd.f32 %v1591_v20, %v233_v59 }
 0x481   :  { %394 = vmatpush.msrb.mxu3 %v144_v39 }
 0x483   :  { %395 = vmatpush.msrb.mxu3 %v136_v42 }
 0x49d   :  { %v544_v8 = vpop.permute.xlu0 %543 }
 0x49e   :  { %v546_v16 = vmul.f32 %v544_v8, %v529_v43  ;;  %v128_v43 = vld [vmem:[#allocation3 + $0x1b8] sm:$0xff] }
 0x49f   :  { %396 = vmatpush.msrb.mxu3 %v128_v43 }
 0x4a0   :  { %548 = vrot.lane.b32.xlu1 %v546_v16, %s1366_s20 }
 0x4a1   :  { %397 = vmatpush.msrb.mxu3 %v120_v45  ;;  %v234_v45 = vperm.slane %v1468_v40, 3 }
 0x4a3   :  { %398 = vmatpush.msrb.mxu3 %v112_v46  ;;  %v325_v46 = vadd.f32 %v324_v56, %v234_v45 }
 0x4a5   :  { %399 = vmatpush.msrb.mxu3 %v104_v47 }
 0x4a7   :  { %400 = vmatpush.msrb.mxu3 %v96_v50 }
 0x4a9   :  { %401 = vmatpush.msrb.mxu3 %v88_v51 }
 0x4ab   :  { %402 = vmatpush.msrb.mxu3 %v80_v52 }
 0x4ac   :  { %403 = vmatmul.f32.vlgmr.msrb.gmra.mxu3 %v1441_v18 }
 0x4ad   :  { %567 = vmatpush.msra.mxu3 %v1509_v7 }
 0x4af   :  { %568 = vmatpush.msra.mxu3 %v1514_v9 }
 0x4b1   :  { %569 = vmatpush.msra.mxu3 %v1520_v10 }
 0x4b3   :  { %570 = vmatpush.msra.mxu3 %v1528_v11 }
 0x4b5   :  { %571 = vmatpush.msra.mxu3 %v1535_v12 }
 0x4b7   :  { %572 = vmatpush.msra.mxu3 %v1542_v13 }
 0x4b9   :  { %573 = vmatpush.msra.mxu3 %v1549_v14 }
 0x4bb   :  { %574 = vmatpush.msra.mxu3 %v1564_v15 }
 0x4bd   :  { %808 = vmatpush.msrb.mxu3 %v1444_v34 }
 0x4bf   :  { %809 = vmatpush.msrb.mxu3 %v1447_v35 }
 0x4c1   :  { %810 = vmatpush.msrb.mxu3 %v1450_v36 }
 0x4c3   :  { %811 = vmatpush.msrb.mxu3 %v1453_v37 }
 0x4da   :  { %v553_v18 = vpop.permute.xlu2 %552 }
 0x512   :  { %v549_v54 = vpop.permute.xlu1 %548 }
 0x513   :  { %v555_v55 = vsel %vm407_vm0, %v549_v54, %v553_v18  ;;  %1212 = vmatmul.msk.f32.vlgmr.msrb.gmra.mxu0 %vm407_vm0, %v549_v54 }
 0x514   :  { %1211 = vmatmul.msk.f32.vlgmr.msra.gmra.mxu3 %vm458_vm1, %v555_v55  ;;  %858 = vmatpush.msrb.mxu0 %v1509_v7 }
 0x515   :  { %955 = vmatpush.msra.mxu3 %v1509_v7 }
 0x516   :  { %859 = vmatpush.msrb.mxu0 %v1514_v9 }
 0x517   :  { %956 = vmatpush.msra.mxu3 %v1514_v9 }
 0x518   :  { %860 = vmatpush.msrb.mxu0 %v1520_v10 }
 0x519   :  { %957 = vmatpush.msra.mxu3 %v1520_v10 }
 0x51a   :  { %861 = vmatpush.msrb.mxu0 %v1528_v11 }
 0x51b   :  { %958 = vmatpush.msra.mxu3 %v1528_v11 }
 0x51c   :  { %862 = vmatpush.msrb.mxu0 %v1535_v12 }
 0x51d   :  { %959 = vmatpush.msra.mxu3 %v1535_v12 }
 0x51e   :  { %863 = vmatpush.msrb.mxu0 %v1542_v13 }
 0x51f   :  { %960 = vmatpush.msra.mxu3 %v1542_v13 }
 0x520   :  { %864 = vmatpush.msrb.mxu0 %v1549_v14 }
 0x521   :  { %961 = vmatpush.msra.mxu3 %v1549_v14 }
 0x522   :  { %865 = vmatpush.msrb.mxu0 %v1564_v15 }
 0x523   :  { %962 = vmatpush.msra.mxu3 %v1564_v15 }
 0x52f   :  { %v1659_v60 = vpop.f32.mrf.mxu3 }
 0x590   :  { %v619_v62 = vpop.f32.mrf.mxu0 }
 0x591   :  { %v622_v63 = vadd.f32 %v619_v62, %v305_v61 }
 0x593   :  { %v623_v0 = vmul.f32 %v1476_v44, %v622_v63 }
 0x595   :  { %1251 = vtanh.f32 %v623_v0 }
 0x597   :  { %v576_v57 = vpop.f32.mrf.mxu3 }
 0x598   :  { %v577_v1 = vadd.f32 %v1600_v23, %v576_v57 }
 0x59a   :  { %v579_v2 = vmul.f32 %v1476_v44, %v577_v1 }
 0x59b   :  { %v1252_v3 = vpop.eup %1251 }
 0x59c   :  { %1253 = vtanh.f32 %v579_v2  ;;  %v625_v4 = vmul.f32 %v1252_v3, %v1482_v48 }
 0x59e   :  { %v626_v5 = vadd.f32 %v1487_v49, %v625_v4 }
 0x5a0   :  { %629 = vrot.lane.b32.xlu0 %v626_v5, %s1361_s28  ;;  %v627_v25 = vmul.f32 %v626_v5, %v1618_v58 }
 0x5a2   :  { %v1254_v6 = vpop.eup %1253 }
 0x5a3   :  { %v581_v20 = vmul.f32 %v1254_v6, %v1482_v48 }
 0x5a5   :  { %v582_v8 = vadd.f32 %v1487_v49, %v581_v20 }
 0x5a7   :  { %585 = vrot.lane.b32.xlu1 %v582_v8, %s1361_s28  ;;  %v583_v29 = vmul.f32 %v582_v8, %v1614_v53 }
 0x612   :  { %v630_v16 = vpop.permute.xlu0 %629 }
 0x613   :  { %v632_v17 = vmul.f32 %v630_v16, %v626_v5 }
 0x615   :  { %634 = vrot.lane.b32.xlu2 %v632_v17, %s1366_s20  ;;  %v235_v17 = vperm.slane %v1468_v40, 4 }
 0x619   :  { %v586_v19 = vpop.permute.xlu1 %585 }
 0x61a   :  { %v588_v24 = vmul.f32 %v586_v19, %v582_v8  ;;  %v345_v19 = vadd.f32 %v1470_v41, %v235_v17 }
 0x61c   :  { %590 = vrot.lane.b32.xlu0 %v588_v24, %s1366_s20 }
 0x66f   :  { %v635_v26 = vpop.permute.xlu2 %634 }
 0x670   :  { %v637_v27 = vadd.f32 %v635_v26, %v627_v25 }
 0x672   :  { %1255 = vtanh.f32 %v637_v27 }
 0x678   :  { %v1256_v28 = vpop.eup %1255 }
 0x679   :  { %640 = vrot.lane.b32.xlu1 %v1256_v28, %s1361_s28 }
 0x68e   :  { %v591_v30 = vpop.permute.xlu0 %590 }
 0x68f   :  { %v593_v31 = vadd.f32 %v591_v30, %v583_v29 }
 0x691   :  { %1257 = vtanh.f32 %v593_v31 }
 0x697   :  { %v1258_v32 = vpop.eup %1257 }
 0x698   :  { %596 = vrot.lane.b32.xlu2 %v1258_v32, %s1361_s28 }
 0x6eb   :  { %v641_v33 = vpop.permute.xlu1 %640 }
 0x6ec   :  { %v643_v38 = vmul.f32 %v641_v33, %v626_v5 }
 0x6ee   :  { %645 = vrot.lane.b32.xlu0 %v643_v38, %s1366_s20 }
 0x6f2   :  { %v597_v39 = vpop.permute.xlu2 %596 }
 0x6f3   :  { %v599_v58 = vmul.f32 %v597_v39, %v582_v8 }
 0x6f5   :  { %649 = vrot.lane.b32.xlu1 %v599_v58, %s1361_s28 }
 0x760   :  { %v646_v42 = vpop.permute.xlu0 %645 }
 0x761   :  { %1214 = vmatmul.msk.f32.vlgmr.msra.gmra.mxu0 %vm407_vm0, %v646_v42 }
 0x762   :  { %1099 = vmatpush.msra.mxu0 %v1444_v34 }
 0x764   :  { %1100 = vmatpush.msra.mxu0 %v1447_v35 }
 0x766   :  { %1101 = vmatpush.msra.mxu0 %v1450_v36 }
 0x767   :  { %v650_v53 = vpop.permute.xlu1 %649 }
 0x768   :  { %v652_v43 = vsel %vm407_vm0, %v646_v42, %v650_v53  ;;  %1102 = vmatpush.msra.mxu0 %v1453_v37 }
 0x769   :  { %1213 = vmatmul.msk.f32.vlgmr.msrb.gmra.mxu2 %vm458_vm1, %v652_v43 }
 0x76a   :  { %1052 = vmatpush.msrb.mxu2 %v1509_v7 }
 0x76c   :  { %1053 = vmatpush.msrb.mxu2 %v1514_v9 }
 0x76e   :  { %1054 = vmatpush.msrb.mxu2 %v1520_v10 }
 0x770   :  { %1055 = vmatpush.msrb.mxu2 %v1528_v11 }
 0x772   :  { %1056 = vmatpush.msrb.mxu2 %v1535_v12 }
 0x774   :  { %1057 = vmatpush.msrb.mxu2 %v1542_v13 }
 0x776   :  { %1058 = vmatpush.msrb.mxu2 %v1549_v14 }
 0x778   :  { %1059 = vmatpush.msrb.mxu2 %v1564_v15 }
 0x7de   :  { %v716_v47 = vpop.f32.mrf.mxu0 }
 0x7df   :  { %v719_v50 = vadd.f32 %v716_v47, %v325_v46 }
 0x7e1   :  { %v720_v7 = vmul.f32 %v1476_v44, %v719_v50 }
 0x7e3   :  { %1259 = vtanh.f32 %v720_v7 }
 0x7e9   :  { %v1260_v9 = vpop.eup %1259 }
 0x7ea   :  { %v722_v10 = vmul.f32 %v1260_v9, %v1482_v48 }
 0x7ec   :  { %v673_v11 = vpop.f32.mrf.mxu2  ;;  %v723_v12 = vadd.f32 %v1487_v49, %v722_v10  ;;  %v1740_v10 = vld [vmem:[%s1833_s2] sm:$0xff] }
 0x7ed   :  { %v674_v13 = vadd.f32 %v1600_v23, %v673_v11  ;;  %v236_v11 = vperm.slane %v1740_v10, 5 }
 0x7ee   :  { %726 = vrot.lane.b32.xlu2 %v723_v12, %s1361_s28  ;;  %v724_v59 = vmul.f32 %v723_v12, %v637_v27 }
 0x7ef   :  { %v676_v14 = vmul.f32 %v1476_v44, %v674_v13 }
 0x7f1   :  { %1261 = vtanh.f32 %v676_v14 }
 0x7f7   :  { %v1262_v15 = vpop.eup %1261 }
 0x7f8   :  { %v678_v51 = vmul.f32 %v1262_v15, %v1482_v48  ;;  %v1747_v15 = vld [vmem:[%s1837_s6] ss:$0 sm:$0xff] }
 0x7fa   :  { %v679_v52 = vadd.f32 %v1487_v49, %v678_v51 }
 0x7fc   :  { %682 = vrot.lane.b32.xlu0 %v679_v52, %s1361_s28  ;;  %v680_v0 = vmul.f32 %v679_v52, %v593_v31 }
 0x848   :  { %v727_v18 = vpop.permute.xlu2 %726 }
 0x849   :  { %v729_v54 = vmul.f32 %v727_v18, %v723_v12 }
 0x84b   :  { %731 = vrot.lane.b32.xlu1 %v729_v54, %s1366_s20 }
 0x86e   :  { %v683_v55 = vpop.permute.xlu0 %682 }
 0x86f   :  { %v685_v56 = vmul.f32 %v683_v55, %v679_v52 }
 0x871   :  { %687 = vrot.lane.b32.xlu2 %v685_v56, %s1366_s20 }
 0x8bd   :  { %v732_v61 = vpop.permute.xlu1 %731 }
 0x8be   :  { %v734_v62 = vadd.f32 %v732_v61, %v724_v59  ;;  %v1761_v59 = vld [vmem:[%s1839_s8] ss:$0 sm:$0xff] }
 0x8c0   :  { %1263 = vtanh.f32 %v734_v62 }
 0x8c6   :  { %v1264_v63 = vpop.eup %1263 }
 0x8c7   :  { %737 = vrot.lane.b32.xlu0 %v1264_v63, %s1361_s28 }
 0x8cb   :  { %v688_v57 = vpop.permute.xlu2 %687 }
 0x8cc   :  { %v690_v1 = vadd.f32 %v688_v57, %v680_v0 }
 0x8ce   :  { %1265 = vtanh.f32 %v690_v1 }
 0x8d4   :  { %v1266_v2 = vpop.eup %1265 }
 0x8d5   :  { %693 = vrot.lane.b32.xlu1 %v1266_v2, %s1361_s28 }
 0x939   :  { %v738_v3 = vpop.permute.xlu0 %737 }
 0x93a   :  { %v740_v4 = vmul.f32 %v738_v3, %v723_v12  ;;  %v365_v12 = vadd.f32 %v1593_v21, %v236_v11  ;;  %v1755_v21 = vld [vmem:[%s1838_s7] ss:$0 sm:$0xff] }
 0x93c   :  { %742 = vrot.lane.b32.xlu2 %v740_v4, %s1366_s20 }
 0x947   :  { %v694_v5 = vpop.permute.xlu1 %693 }
 0x948   :  { %v696_v6 = vmul.f32 %v694_v5, %v679_v52 }
 0x94a   :  { %746 = vrot.lane.b32.xlu0 %v696_v6, %s1361_s28 }
 0x996   :  { %v743_v20 = vpop.permute.xlu2 %742 }
 0x997   :  { %1216 = vmatmul.msk.f32.vlgmr.msrb.gmra.mxu3 %vm407_vm0, %v743_v20 }
 0x998   :  { %1002 = vmatpush.msrb.mxu3 %v1444_v34 }
 0x99a   :  { %1003 = vmatpush.msrb.mxu3 %v1447_v35 }
 0x99c   :  { %1004 = vmatpush.msrb.mxu3 %v1450_v36 }
 0x99e   :  { %1005 = vmatpush.msrb.mxu3 %v1453_v37 }
 0x9bc   :  { %v747_v8 = vpop.permute.xlu0 %746 }
 0x9bd   :  { %v749_v16 = vsel %vm407_vm0, %v743_v20, %v747_v8 }
 0x9be   :  { %1215 = vmatmul.msk.f32.vlgmr.msrb.gmra.mxu1 %vm458_vm1, %v749_v16 }
 0xa1a   :  { %v813_v24 = vpop.f32.mrf.mxu3 }
 0xa1b   :  { %v816_v25 = vadd.f32 %v813_v24, %v345_v19 }
 0xa1d   :  { %v817_v26 = vmul.f32 %v1476_v44, %v816_v25 }
 0xa1f   :  { %1267 = vtanh.f32 %v817_v26 }
 0xa25   :  { %v1268_v34 = vpop.eup %1267 }
 0xa26   :  { %v819_v35 = vmul.f32 %v1268_v34, %v1482_v48 }
 0xa28   :  { %v820_v36 = vadd.f32 %v1487_v49, %v819_v35 }
 0xa2a   :  { %823 = vrot.lane.b32.xlu1 %v820_v36, %s1361_s28  ;;  %v821_v38 = vmul.f32 %v820_v36, %v734_v62 }
 0xa3b   :  { %v770_v37 = vpop.f32.mrf.mxu1 }
 0xa3c   :  { %v771_v27 = vadd.f32 %v1600_v23, %v770_v37 }
 0xa3e   :  { %v773_v28 = vmul.f32 %v1476_v44, %v771_v27 }
 0xa40   :  { %1269 = vtanh.f32 %v773_v28 }
 0xa46   :  { %v1270_v40 = vpop.eup %1269 }
 0xa47   :  { %v775_v41 = vmul.f32 %v1270_v40, %v1482_v48  ;;  %v237_v40 = vperm.slane %v1740_v10, 6 }
 0xa49   :  { %v776_v29 = vadd.f32 %v1487_v49, %v775_v41 }
 0xa4b   :  { %779 = vrot.lane.b32.xlu2 %v776_v29, %s1361_s28  ;;  %v777_v44 = vmul.f32 %v776_v29, %v690_v1 }
 0xa9c   :  { %v824_v30 = vpop.permute.xlu1 %823 }
 0xa9d   :  { %v826_v31 = vmul.f32 %v824_v30, %v820_v36 }
 0xa9f   :  { %828 = vrot.lane.b32.xlu0 %v826_v31, %s1366_s20 }
 0xaa5   :  { %v780_v32 = vpop.permute.xlu2 %779 }
 0xaa6   :  { %v782_v33 = vmul.f32 %v780_v32, %v776_v29 }
 0xaa8   :  { %784 = vrot.lane.b32.xlu1 %v782_v33, %s1366_s20 }
 0xb11   :  { %v829_v39 = vpop.permute.xlu0 %828 }
 0xb12   :  { %v831_v58 = vadd.f32 %v829_v39, %v821_v38 }
 0xb14   :  { %1271 = vtanh.f32 %v831_v58 }
 0xb1a   :  { %v1272_v42 = vpop.eup %1271  ;;  %v785_v53 = vpop.permute.xlu1 %784 }
 0xb1b   :  { %v787_v48 = vadd.f32 %v785_v53, %v777_v44  ;;  %834 = vrot.lane.b32.xlu2 %v1272_v42, %s1361_s28 }
 0xb1d   :  { %1273 = vtanh.f32 %v787_v48 }
 0xb23   :  { %v1274_v49 = vpop.eup %1273 }
 0xb24   :  { %790 = vrot.lane.b32.xlu0 %v1274_v49, %s1361_s28 }
 0xb75   :  { %v835_v43 = vpop.permute.xlu2 %834 }
 0xb76   :  { %v837_v45 = vmul.f32 %v835_v43, %v820_v36 }
 0xb78   :  { %839 = vrot.lane.b32.xlu1 %v837_v45, %s1366_s20 }
 0xb96   :  { %v791_v46 = vpop.permute.xlu0 %790 }
 0xb97   :  { %v793_v47 = vmul.f32 %v791_v46, %v776_v29  ;;  %v385_v29 = vadd.f32 %v1595_v22, %v237_v40 }
 0xb99   :  { %843 = vrot.lane.b32.xlu2 %v793_v47, %s1361_s28 }
 0xbea   :  { %v840_v50 = vpop.permute.xlu1 %839 }
 0xbeb   :  { %1218 = vmatmul.msk.f32.vlgmr.msra.gmra.mxu2 %vm407_vm0, %v840_v50 }
 0xbf3   :  { %v844_v7 = vpop.permute.xlu2 %843 }
 0xbf4   :  { %v846_v9 = vsel %vm407_vm0, %v840_v50, %v844_v7 }
 0xbf5   :  { %1217 = vmatmul.msk.f32.vlgmr.msrb.gmra.mxu0 %vm458_vm1, %v846_v9 }
 0xc6e   :  { %v910_v13 = vpop.f32.mrf.mxu2 }
 0xc6f   :  { %v913_v14 = vadd.f32 %v910_v13, %v365_v12 }
 0xc71   :  { %v914_v51 = vmul.f32 %v1747_v15, %v913_v14 }
 0xc72   :  { %v867_v52 = vpop.f32.mrf.mxu0 }
 0xc73   :  { %1275 = vtanh.f32 %v914_v51  ;;  %v868_v18 = vadd.f32 %v1600_v23, %v867_v52 }
 0xc75   :  { %v870_v54 = vmul.f32 %v1747_v15, %v868_v18 }
 0xc77   :  { %1277 = vtanh.f32 %v870_v54 }
 0xc79   :  { %v1276_v55 = vpop.eup %1275 }
 0xc7a   :  { %v916_v56 = vmul.f32 %v1755_v21, %v1276_v55  ;;  %v238_v55 = vperm.slane %v1740_v10, 7 }
 0xc7c   :  { %v917_v61 = vadd.f32 %v1761_v59, %v916_v56  ;;  %v405_v56 = vadd.f32 %v1659_v60, %v238_v55 }
 0xc7d   :  { %v1278_v62 = vpop.eup %1277 }
 0xc7e   :  { %920 = vrot.lane.b32.xlu1 %v917_v61, %s1361_s28  ;;  %v872_v63 = vmul.f32 %v1755_v21, %v1278_v62  ;;  %v918_v8 = vmul.f32 %v917_v61, %v831_v58 }
 0xc80   :  { %v873_v0 = vadd.f32 %v1761_v59, %v872_v63 }
 0xc82   :  { %876 = vrot.lane.b32.xlu0 %v873_v0, %s1361_s28  ;;  %v874_v4 = vmul.f32 %v873_v0, %v787_v48 }
 0xcf0   :  { %v921_v57 = vpop.permute.xlu1 %920 }
 0xcf1   :  { %v923_v1 = vmul.f32 %v921_v57, %v917_v61 }
 0xcf3   :  { %925 = vrot.lane.b32.xlu0 %v923_v1, %s1366_s20 }
 0xcf4   :  { %v877_v2 = vpop.permute.xlu0 %876 }
 0xcf5   :  { %v879_v3 = vmul.f32 %v877_v2, %v873_v0 }
 0xcf7   :  { %881 = vrot.lane.b32.xlu2 %v879_v3, %s1366_s20 }
 0xd51   :  { %v882_v5 = vpop.permute.xlu2 %881 }
 0xd52   :  { %v884_v6 = vadd.f32 %v882_v5, %v874_v4 }
 0xd54   :  { %1279 = vtanh.f32 %v884_v6 }
 0xd5a   :  { %v1280_v20 = vpop.eup %1279 }
 0xd5b   :  { %887 = vrot.lane.b32.xlu1 %v1280_v20, %s1361_s28 }
 0xd65   :  { %v926_v16 = vpop.permute.xlu0 %925 }
 0xd66   :  { %v928_v17 = vadd.f32 %v926_v16, %v918_v8 }
 0xd68   :  { %1281 = vtanh.f32 %v928_v17 }
 0xd6e   :  { %v1282_v19 = vpop.eup %1281 }
 0xd6f   :  { %931 = vrot.lane.b32.xlu2 %v1282_v19, %s1361_s28 }
 0xdc9   :  { %v932_v24 = vpop.permute.xlu2 %931 }
 0xdca   :  { %v934_v25 = vmul.f32 %v932_v24, %v917_v61 }
 0xdcc   :  { %936 = vrot.lane.b32.xlu0 %v934_v25, %s1366_s20 }
 0xdcd   :  { %v888_v26 = vpop.permute.xlu1 %887 }
 0xdce   :  { %v890_v34 = vmul.f32 %v888_v26, %v873_v0 }
 0xdd0   :  { %940 = vrot.lane.b32.xlu1 %v890_v34, %s1361_s28 }
 0xe3e   :  { %v937_v35 = vpop.permute.xlu0 %936 }
 0xe42   :  { %v941_v36 = vpop.permute.xlu1 %940 }
 0xe43   :  { %v943_v37 = vsel %vm407_vm0, %v937_v35, %v941_v36 }
 0xe44   :  { %1219 = vmatmul.msk.f32.vlgmr.msra.gmra.mxu3 %vm458_vm1, %v943_v37 }
 0xe4c   :  { %1220 = vmatmul.msk.f32.vlgmr.msrb.gmra.mxu3 %vm407_vm0, %v937_v35 }
 0xec7   :  { %v964_v27 = vpop.f32.mrf.mxu3 }
 0xec8   :  { %v965_v28 = vadd.f32 %v1600_v23, %v964_v27 }
 0xeca   :  { %v967_v41 = vmul.f32 %v1747_v15, %v965_v28 }
 0xecc   :  { %1283 = vtanh.f32 %v967_v41 }
 0xecf   :  { %v1007_v30 = vpop.f32.mrf.mxu3 }
 0xed0   :  { %v1010_v31 = vadd.f32 %v1007_v30, %v385_v29 }
 0xed2   :  { %v1284_v32 = vpop.eup %1283  ;;  %v1011_v33 = vmul.f32 %v1747_v15, %v1010_v31 }
 0xed3   :  { %v969_v38 = vmul.f32 %v1755_v21, %v1284_v32 }
 0xed4   :  { %1285 = vtanh.f32 %v1011_v33 }
 0xed5   :  { %v970_v39 = vadd.f32 %v1761_v59, %v969_v38 }
 0xed7   :  { %973 = vrot.lane.b32.xlu2 %v970_v39, %s1361_s28  ;;  %v971_v43 = vmul.f32 %v970_v39, %v884_v6 }
 0xeda   :  { %v1286_v58 = vpop.eup %1285 }
 0xedb   :  { %v1013_v44 = vmul.f32 %v1755_v21, %v1286_v58 }
 0xedd   :  { %v1014_v42 = vadd.f32 %v1761_v59, %v1013_v44  ;;  %v1237_v44 = vld [vmem:[%s1840_s9] ss:$0 sm:$0xff] }
 0xedf   :  { %1017 = vrot.lane.b32.xlu0 %v1014_v42, %s1361_s28  ;;  %v1015_v47 = vmul.f32 %v1014_v42, %v928_v17 }
 0xf31   :  { %v974_v22 = vpop.permute.xlu2 %973 }
 0xf32   :  { %v976_v53 = vmul.f32 %v974_v22, %v970_v39 }
 0xf34   :  { %978 = vrot.lane.b32.xlu1 %v976_v53, %s1366_s20 }
 0xf51   :  { %v1018_v48 = vpop.permute.xlu0 %1017 }
 0xf52   :  { %v1020_v49 = vmul.f32 %v1018_v48, %v1014_v42 }
 0xf54   :  { %1022 = vrot.lane.b32.xlu2 %v1020_v49, %s1366_s20 }
 0xfa6   :  { %v979_v45 = vpop.permute.xlu1 %978 }
 0xfa7   :  { %v981_v46 = vadd.f32 %v979_v45, %v971_v43 }
 0xfa9   :  { %1287 = vtanh.f32 %v981_v46 }
 0xfae   :  { %v1023_v50 = vpop.permute.xlu2 %1022 }
 0xfaf   :  { %v1288_v7 = vpop.eup %1287  ;;  %v1025_v9 = vadd.f32 %v1023_v50, %v1015_v47  ;;  %v1238_v47 = vld [vmem:[#allocation2] ss:$0 sm:$0xff] }
 0xfb0   :  { %984 = vrot.lane.b32.xlu0 %v1288_v7, %s1361_s28 }
 0xfb1   :  { %1289 = vtanh.f32 %v1025_v9 }
 0xfb7   :  { %v1290_v11 = vpop.eup %1289 }
 0xfb8   :  { %1028 = vrot.lane.b32.xlu1 %v1290_v11, %s1361_s28 }
0x1022   :  { %v985_v12 = vpop.permute.xlu0 %984 }
0x1023   :  { %v987_v13 = vmul.f32 %v985_v12, %v970_v39 }
0x1025   :  { %1037 = vrot.lane.b32.xlu0 %v987_v13, %s1361_s28 }
0x102a   :  { %v1029_v14 = vpop.permute.xlu1 %1028 }
0x102b   :  { %v1031_v51 = vmul.f32 %v1029_v14, %v1014_v42 }
0x102d   :  { %1033 = vrot.lane.b32.xlu2 %v1031_v51, %s1366_s20 }
0x1087   :  { %v1034_v52 = vpop.permute.xlu2 %1033 }
0x1088   :  { %1222 = vmatmul.msk.f32.vlgmr.msra.gmra.mxu0 %vm407_vm0, %v1034_v52 }
0x1097   :  { %v1038_v18 = vpop.permute.xlu0 %1037 }
0x1098   :  { %v1040_v54 = vsel %vm407_vm0, %v1034_v52, %v1038_v18 }
0x1099   :  { %1221 = vmatmul.msk.f32.vlgmr.msrb.gmra.mxu2 %vm458_vm1, %v1040_v54 }
0x1105   :  { %v1104_v61 = vpop.f32.mrf.mxu0 }
0x1106   :  { %v1107_v62 = vadd.f32 %v1104_v61, %v405_v56 }
0x1108   :  { %v1108_v63 = vmul.f32 %v1747_v15, %v1107_v62 }
0x110a   :  { %1291 = vtanh.f32 %v1108_v63 }
0x1110   :  { %v1292_v0 = vpop.eup %1291 }
0x1111   :  { %v1110_v57 = vmul.f32 %v1755_v21, %v1292_v0 }
0x1113   :  { %v1111_v1 = vadd.f32 %v1761_v59, %v1110_v57 }
0x1115   :  { %1114 = vrot.lane.b32.xlu2 %v1111_v1, %s1361_s28  ;;  %v1112_v17 = vmul.f32 %v1111_v1, %v1025_v9 }
0x111c   :  { %v1061_v2 = vpop.f32.mrf.mxu2 }
0x111d   :  { %v1062_v3 = vadd.f32 %v1600_v23, %v1061_v2 }
0x111f   :  { %v1064_v4 = vmul.f32 %v1747_v15, %v1062_v3 }
0x1121   :  { %1293 = vtanh.f32 %v1064_v4 }
0x1127   :  { %v1294_v10 = vpop.eup %1293 }
0x1128   :  { %v1066_v60 = vmul.f32 %v1755_v21, %v1294_v10 }
0x112a   :  { %v1067_v5 = vadd.f32 %v1761_v59, %v1066_v60 }
0x112c   :  { %1070 = vrot.lane.b32.xlu1 %v1067_v5, %s1361_s28  ;;  %v1068_v26 = vmul.f32 %v1067_v5, %v981_v46 }
0x116f   :  { %v1115_v6 = vpop.permute.xlu2 %1114 }
0x1170   :  { %v1117_v20 = vmul.f32 %v1115_v6, %v1111_v1 }
0x1172   :  { %1119 = vrot.lane.b32.xlu1 %v1117_v20, %s1366_s20 }
0x119e   :  { %v1071_v8 = vpop.permute.xlu1 %1070 }
0x119f   :  { %v1073_v16 = vmul.f32 %v1071_v8, %v1067_v5 }
0x11a1   :  { %1075 = vrot.lane.b32.xlu0 %v1073_v16, %s1366_s20 }
0x11e4   :  { %v1120_v19 = vpop.permute.xlu1 %1119 }
0x11e5   :  { %v1122_v24 = vadd.f32 %v1120_v19, %v1112_v17 }
0x11e7   :  { %1295 = vtanh.f32 %v1122_v24 }
0x11ed   :  { %v1296_v25 = vpop.eup %1295 }
0x11ee   :  { %1125 = vrot.lane.b32.xlu0 %v1296_v25, %s1361_s28 }
0x1213   :  { %v1076_v34 = vpop.permute.xlu0 %1075 }
0x1214   :  { %v1078_v35 = vadd.f32 %v1076_v34, %v1068_v26 }
0x1216   :  { %1297 = vtanh.f32 %v1078_v35 }
0x121c   :  { %v1298_v36 = vpop.eup %1297 }
0x121d   :  { %1081 = vrot.lane.b32.xlu2 %v1298_v36, %s1361_s28 }
0x1260   :  { %v1126_v37 = vpop.permute.xlu0 %1125 }
0x1261   :  { %v1128_v27 = vmul.f32 %v1126_v37, %v1111_v1 }
0x1263   :  { %1130 = vrot.lane.b32.xlu1 %v1128_v27, %s1366_s20 }
0x1277   :  { %v1082_v28 = vpop.permute.xlu2 %1081 }
0x1278   :  { %v1084_v40 = vmul.f32 %v1082_v28, %v1067_v5 }
0x127a   :  { %1134 = vrot.lane.b32.xlu2 %v1084_v40, %s1361_s28 }
0x12d4   :  { %v1135_v41 = vpop.permute.xlu2 %1134 }
0x12d5   :  { %v1131_v29 = vpop.permute.xlu1 %1130 }
0x12d6   :  { %v1137_v30 = vsel %vm407_vm0, %v1131_v29, %v1135_v41 }
0x12d7   :  { %1223 = vmatmul.msk.f32.vlgmr.msra.gmra.mxu1 %vm458_vm1, %v1137_v30 }
0x1354   :  { %v1158_v31 = vpop.f32.mrf.mxu1 }
0x1355   :  { %v1159_v32 = vadd.f32 %v1600_v23, %v1158_v31 }
0x1357   :  { %v1161_v33 = vmul.f32 %v1747_v15, %v1159_v32 }
0x1359   :  { %1299 = vtanh.f32 %v1161_v33 }
0x135f   :  { %v1300_v38 = vpop.eup %1299 }
0x1360   :  { %v1163_v39 = vmul.f32 %v1755_v21, %v1300_v38 }
0x1362   :  { %v1164_v58 = vadd.f32 %v1761_v59, %v1163_v39 }
0x1364   :  { %1167 = vrot.lane.b32.xlu0 %v1164_v58, %s1361_s28  ;;  %v1165_v23 = vmul.f32 %v1164_v58, %v1078_v35 }
0x136c   :  { %1185 = vrot.lane.b32.xlu0 %v1237_v44, %s1367_s22 }
0x13d6   :  { %v1168_v42 = vpop.permute.xlu0 %1167 }
0x13d7   :  { %v1170_v22 = vmul.f32 %v1168_v42, %v1164_v58 }
0x13d9   :  { %1172 = vrot.lane.b32.xlu1 %v1170_v22, %s1366_s20 }
0x13de   :  { %v1186_v59 = vpop.permute.xlu0 %1185 }
0x144b   :  { %v1173_v15 = vpop.permute.xlu1 %1172 }
0x144c   :  { %v1175_v53 = vadd.f32 %v1173_v15, %v1165_v23 }
0x144e   :  { %1301 = vtanh.f32 %v1175_v53 }
0x1454   :  { %v1302_v48 = vpop.eup %1301 }
0x1455   :  { %1178 = vrot.lane.b32.xlu2 %v1302_v48, %s1361_s28 }
0x14af   :  { %v1179_v21 = vpop.permute.xlu2 %1178 }
0x14b0   :  { %v1181_v49 = vmul.f32 %v1179_v21, %v1164_v58 }
0x14b2   :  { %v1188_v43 = vmul.f32 %v1186_v59, %v1181_v49 }
0x14b4   :  { %1190 = vrot.lane.b32.xlu1 %v1188_v43, %s1366_s20 }
0x1526   :  { %v1191_v45 = vpop.permute.xlu1 %1190 }
0x1527   :  { %v1193_v46 = vsel %vm407_vm0, %v1191_v45, 0.0 }
0x1528   :  { %1194 = vadd.xlane.f32.xlu2 %v1193_v46 }
0x159b   :  { %v1195_v50 = vpop.xlane.xlu2 %1194 }
0x159c   :  { %v1200_v7 = vadd.f32 %v1238_v47, %v1195_v50 }
0x159e   :  { %1202 = vst.msk [vmem:[%s1842_s11] sm:$0xff] %vm1201_vm2, %v1200_v7 }
0x159f   :  { %1207 = vsyncpa [#allocation4], 1 }
0x15a0   :  { %1208 = vsyncpa [#allocation6], 1 }

</bundles_post_ra>
